<compile_context>
chip_gen: v7x
topology: tpu7x:2x2x1
jax: 0.10.0
libtpu: 0.0.40
codegen_flags: <defaults>
</compile_context>

<pallas_src>
import functools
import math

import jax
import jax.numpy as jnp
from jax.experimental import pallas as pl
from jax.experimental.pallas import tpu as pltpu


def _layernorm(x, g, b, eps=1e-5):
    # x: (R, D) f32, g/b: (1, D)
    mu = jnp.mean(x, axis=-1, keepdims=True)
    var = jnp.mean((x - mu) ** 2, axis=-1, keepdims=True)
    return (x - mu) * jax.lax.rsqrt(var + eps) * g + b


def encoder_block_kernel(
    x_ref, ln1_g_ref, ln1_b_ref, wqkv_ref, bqkv_ref, wo_ref, bo_ref,
    ln2_g_ref, ln2_b_ref, w1_ref, b1_ref, w2_ref, b2_ref,
    o_ref, acc_ref, ln2_ref, *, h):
    f = pl.program_id(1)
    nff = pl.num_programs(1)
    bpt, S, D = x_ref.shape
    R = bpt * S
    dk = D // h
    inv_sqrt_dk = 1.0 / math.sqrt(dk)
    bf16 = jnp.bfloat16

    # ---- attention + residual + LN2: computed once per row tile (f == 0) ----
    @pl.when(f == 0)
    def _attention():
        x = x_ref[...].reshape(R, D).astype(jnp.float32)
        ln1 = _layernorm(x, ln1_g_ref[...], ln1_b_ref[...])

        # fused QKV projection: one wide MXU matmul (R, D) x (D, 3D)
        qkv = jnp.dot(ln1.astype(bf16), wqkv_ref[...],
                      preferred_element_type=jnp.float32) + bqkv_ref[...]
        q = qkv[:, 0:D]
        k = qkv[:, D:2 * D]
        v = qkv[:, 2 * D:3 * D]

        def split_heads(t):
            # (R, D) -> (h*bpt, S, dk): heads batched on the leading (major) axis,
            # no lane-dim relayout beyond the static per-head slice.
            return jnp.concatenate(
                [t[:, i * dk:(i + 1) * dk].reshape(bpt, S, dk) for i in range(h)],
                axis=0)

        qh = split_heads(q).astype(bf16)
        kh = split_heads(k).astype(bf16)
        vh = split_heads(v).astype(bf16)

        # TODO(synk): only the mask=None attention path is implemented.
        s = jnp.einsum("bqd,bkd->bqk", qh, kh,
                       preferred_element_type=jnp.float32) * inv_sqrt_dk
        s = s - jnp.max(s, axis=-1, keepdims=True)
        e = jnp.exp(s)
        p = e * pl.reciprocal(jnp.sum(e, axis=-1, keepdims=True), approx=True)
        ctx = jnp.einsum("bqk,bkd->bqd", p.astype(bf16), vh,
                         preferred_element_type=jnp.float32)     # (h*bpt, S, dk)
        ctx = ctx.reshape(h, R, dk)

        # Wo applied as a per-head accumulation (avoids the lane concatenate).
        wo = wo_ref[...]
        attn = x + bo_ref[...]
        for hi in range(h):
            attn = attn + jnp.dot(ctx[hi].astype(bf16),
                                  wo[hi * dk:(hi + 1) * dk, :],
                                  preferred_element_type=jnp.float32)

        # cache LN2 (bf16, ready for the MXU) and initialize the FFN accumulator
        ln2_ref[...] = _layernorm(attn, ln2_g_ref[...], ln2_b_ref[...]).astype(bf16)
        acc_ref[...] = attn + b2_ref[...]

    # ---- FFN partial: reduction over d_ff tiles ----
    h1 = jnp.dot(ln2_ref[...], w1_ref[...],
                 preferred_element_type=jnp.float32) + b1_ref[...]
    h1 = jnp.maximum(h1, 0.0)
    acc_ref[...] += jnp.dot(h1.astype(bf16), w2_ref[...],
                            preferred_element_type=jnp.float32)

    @pl.when(f == nff - 1)
    def _write():
        o_ref[...] = acc_ref[...].reshape(bpt, S, D).astype(o_ref.dtype)


def encoder_block(x, params, h, *, target_rows=256, max_ff_tile=1024):
    B, S, D = x.shape
    assert D % h == 0, "d_embed must be divisible by the number of heads"
    d_ff = params["w1"].shape[1]
    bf16 = jnp.bfloat16

    # batches per row tile: fill the MXU M dimension (aim for ~target_rows rows)
    bpt = max(1, min(B, target_rows // max(S, 1)))
    while B % bpt:
        bpt -= 1
    nb = B // bpt
    R = bpt * S

    # d_ff reduction tile (multiples of 128 so BlockSpec tiling is legal)
    tf = d_ff
    if d_ff > max_ff_tile:
        for cand in (1024, 512, 256, 128):
            if d_ff % cand == 0:
                tf = cand
                break
    nff = d_ff // tf

    # fused QKV weight / bias; weights in bf16 (halves DMA bytes + 2x MXU rate)
    wqkv = jnp.concatenate([params["wq"], params["wk"], params["wv"]], axis=1).astype(bf16)
    bqkv = jnp.concatenate([params["bq"], params["bk"], params["bv"]], axis=1)
    wo = params["wo"].astype(bf16)
    w1 = params["w1"].astype(bf16)
    w2 = params["w2"].astype(bf16)

    def const2d(shape):
        return pl.BlockSpec(shape, lambda b, f: (0, 0))

    xspec = pl.BlockSpec((bpt, S, D), lambda b, f: (b, 0, 0))

    # rough VMEM budget (double-buffered streams + resident weights + scratch)
    def nbytes(shape, dt):
        return math.prod(shape) * jnp.dtype(dt).itemsize

    est = (2 * nbytes((bpt, S, D), x.dtype) * 2                    # x + out blocks
           + 2 * (nbytes((D, tf), bf16) + nbytes((tf, D), bf16)
                  + nbytes((1, tf), jnp.float32))                  # streamed FFN tiles
           + 2 * (nbytes((D, 3 * D), bf16) + nbytes((D, D), bf16)) # attn weights
           + nbytes((R, D), jnp.float32) + nbytes((R, D), bf16)    # scratch
           + nbytes((h * bpt, S, S), jnp.float32)                  # score temporaries
           + 3 * nbytes((R, D), jnp.float32))
    vmem_limit = int(min(64 * 1024 * 1024, max(32 * 1024 * 1024, 2 * est)))

    return pl.pallas_call(
        functools.partial(encoder_block_kernel, h=h),
        out_shape=jax.ShapeDtypeStruct((B, S, D), x.dtype),
        grid=(nb, nff),
        in_specs=[xspec,
                  const2d((1, D)), const2d((1, D)),                 # ln1 gamma / beta
                  const2d((D, 3 * D)), const2d((1, 3 * D)),         # fused QKV w / b
                  const2d((D, D)), const2d((1, D)),                 # wo / bo
                  const2d((1, D)), const2d((1, D)),                 # ln2 gamma / beta
                  pl.BlockSpec((D, tf), lambda b, f: (0, f)),       # w1 tile
                  pl.BlockSpec((1, tf), lambda b, f: (0, f)),       # b1 tile
                  pl.BlockSpec((tf, D), lambda b, f: (f, 0)),       # w2 tile
                  const2d((1, D))],                                 # b2
        out_specs=xspec,
        scratch_shapes=[pltpu.VMEM((R, D), jnp.float32),            # FFN accumulator
                        pltpu.VMEM((R, D), jnp.bfloat16)],          # cached LN2
        compiler_params=pltpu.CompilerParams(
            dimension_semantics=("parallel", "arbitrary"),
            vmem_limit_bytes=vmem_limit),
    )(x, params["ln1_g"], params["ln1_b"], wqkv, bqkv, wo, params["bo"],
      params["ln2_g"], params["ln2_b"], w1, params["b1"], w2, params["b2"])


# ---------------- pure-JAX reference (mirrors the PyTorch forward in eval mode)
def encoder_block_ref(x, p, h):
    def ln(y, g, b):
        mu = y.mean(-1, keepdims=True)
        var = ((y - mu) ** 2).mean(-1, keepdims=True)
        return (y - mu) / jnp.sqrt(var + 1e-5) * g + b

    B, S, D = x.shape
    dk = D // h
    y = ln(x, p["ln1_g"][0], p["ln1_b"][0])
    q = y @ p["wq"] + p["bq"][0]
    k = y @ p["wk"] + p["bk"][0]
    v = y @ p["wv"] + p["bv"][0]
    q = q.reshape(B, S, h, dk).transpose(0, 2, 1, 3)
    k = k.reshape(B, S, h, dk).transpose(0, 2, 1, 3)
    v = v.reshape(B, S, h, dk).transpose(0, 2, 1, 3)
    s = jnp.einsum("bhqd,bhkd->bhqk", q, k) / math.sqrt(dk)
    pmat = jax.nn.softmax(s, axis=-1)
    ctx = jnp.einsum("bhqk,bhkd->bhqd", pmat, v).transpose(0, 2, 1, 3).reshape(B, S, D)
    x = x + ctx @ p["wo"] + p["bo"][0]
    y = ln(x, p["ln2_g"][0], p["ln2_b"][0])
    ff = jnp.maximum(y @ p["w1"] + p["b1"][0], 0.0) @ p["w2"] + p["b2"][0]
    return x + ff


def init_params(key, d_embed, d_ff):
    ks = jax.random.split(key, 6)
    scale = 0.02
    D, F = d_embed, d_ff
    return {
        "ln1_g": jnp.ones((1, D), jnp.float32),
        "ln1_b": jnp.zeros((1, D), jnp.float32),
        "wq": scale * jax.random.normal(ks[0], (D, D), jnp.float32),
        "bq": jnp.zeros((1, D), jnp.float32),
        "wk": scale * jax.random.normal(ks[1], (D, D), jnp.float32),
        "bk": jnp.zeros((1, D), jnp.float32),
        "wv": scale * jax.random.normal(ks[2], (D, D), jnp.float32),
        "bv": jnp.zeros((1, D), jnp.float32),
        "wo": scale * jax.random.normal(ks[3], (D, D), jnp.float32),
        "bo": jnp.zeros((1, D), jnp.float32),
        "ln2_g": jnp.ones((1, D), jnp.float32),
        "ln2_b": jnp.zeros((1, D), jnp.float32),
        "w1": scale * jax.random.normal(ks[4], (D, F), jnp.float32),
        "b1": jnp.zeros((1, F), jnp.float32),
        "w2": scale * jax.random.normal(ks[5], (F, D), jnp.float32),
        "b2": jnp.zeros((1, D), jnp.float32),
    }


def _run_case(key, B, S, D, H, DFF, tag):
    kx, kp = jax.random.split(key)
    x = jax.random.normal(kx, (B, S, D), jnp.float32)
    params = init_params(kp, D, DFF)

    out = encoder_block(x, params, H)
    out = jax.block_until_ready(out)

    ref = encoder_block_ref(x, params, H)
    assert out.shape == (B, S, D)
    # bf16 matmul inputs + approx reciprocal -> loosened tolerance vs f32 reference
    assert jnp.allclose(out, ref, atol=1e-2, rtol=1e-2), f"mismatch vs JAX reference ({tag})"


if __name__ == "__main__":
    key = jax.random.PRNGKey(0)
    k1, k2 = jax.random.split(key)

    # small config consistent with the module (batch=2, seq=8, d_embed=32, h=4, d_ff=64)
    _run_case(k1, B=2, S=8, D=32, H=4, DFF=64, tag="small")

    # moderate config exercising both grid axes (row tiling + d_ff reduction tiling)
    _run_case(k2, B=4, S=128, D=256, H=8, DFF=2048, tag="tiled")

    print("KERNEL_OK")
</pallas_src>

<mosaic_0001>
module attributes {stable_mosaic.version = 11 : i64} {
  func.func @encoder_block_kernel(%arg0: i32, %arg1: i32, %arg2: memref<2x8x32xf32, #tpu.memory_space<vmem>>, %arg3: memref<1x32xf32, #tpu.memory_space<vmem>>, %arg4: memref<1x32xf32, #tpu.memory_space<vmem>>, %arg5: memref<32x96xbf16, #tpu.memory_space<vmem>>, %arg6: memref<1x96xf32, #tpu.memory_space<vmem>>, %arg7: memref<32x32xbf16, #tpu.memory_space<vmem>>, %arg8: memref<1x32xf32, #tpu.memory_space<vmem>>, %arg9: memref<1x32xf32, #tpu.memory_space<vmem>>, %arg10: memref<1x32xf32, #tpu.memory_space<vmem>>, %arg11: memref<32x64xbf16, #tpu.memory_space<vmem>>, %arg12: memref<1x64xf32, #tpu.memory_space<vmem>>, %arg13: memref<64x32xbf16, #tpu.memory_space<vmem>>, %arg14: memref<1x32xf32, #tpu.memory_space<vmem>>, %arg15: memref<2x8x32xf32, #tpu.memory_space<vmem>>, %arg16: memref<16x32xf32, #tpu.memory_space<vmem>>, %arg17: memref<16x32xbf16, #tpu.memory_space<vmem>>) attributes {dimension_semantics = [#tpu.dimension_semantics<parallel>, #tpu.dimension_semantics<arbitrary>], iteration_bounds = array<i64: 1, 1>, scalar_prefetch = 0 : i64, scratch_operands = 2 : i64, tpu.core_type = #tpu.core_type<tc>, window_params = [{transform_indices = @transform_0, window_bounds = array<i64: 2, 8, 32>}, {pipeline_mode = #tpu.pipeline_mode<synchronous>, transform_indices = @transform_1, window_bounds = array<i64: 1, 32>}, {pipeline_mode = #tpu.pipeline_mode<synchronous>, transform_indices = @transform_2, window_bounds = array<i64: 1, 32>}, {pipeline_mode = #tpu.pipeline_mode<synchronous>, transform_indices = @transform_3, window_bounds = array<i64: 32, 96>}, {pipeline_mode = #tpu.pipeline_mode<synchronous>, transform_indices = @transform_4, window_bounds = array<i64: 1, 96>}, {pipeline_mode = #tpu.pipeline_mode<synchronous>, transform_indices = @transform_5, window_bounds = array<i64: 32, 32>}, {pipeline_mode = #tpu.pipeline_mode<synchronous>, transform_indices = @transform_6, window_bounds = array<i64: 1, 32>}, {pipeline_mode = #tpu.pipeline_mode<synchronous>, transform_indices = @transform_7, window_bounds = array<i64: 1, 32>}, {pipeline_mode = #tpu.pipeline_mode<synchronous>, transform_indices = @transform_8, window_bounds = array<i64: 1, 32>}, {transform_indices = @transform_9, window_bounds = array<i64: 32, 64>}, {transform_indices = @transform_10, window_bounds = array<i64: 1, 64>}, {transform_indices = @transform_11, window_bounds = array<i64: 64, 32>}, {pipeline_mode = #tpu.pipeline_mode<synchronous>, transform_indices = @transform_12, window_bounds = array<i64: 1, 32>}, {transform_indices = @transform_13, window_bounds = array<i64: 2, 8, 32>}]} {
    %c0_i32 = arith.constant 0 : i32
    %0 = arith.cmpi eq, %arg1, %c0_i32 : i32
    %1 = arith.extui %0 : i1 to i32
    %c0_i32_0 = arith.constant 0 : i32
    %2 = arith.cmpi ne, %1, %c0_i32_0 : i32
    scf.if %2 {
      %c0_16 = arith.constant 0 : index
      %c0_17 = arith.constant 0 : index
      %c0_18 = arith.constant 0 : index
      %20 = vector.load %arg2[%c0_16, %c0_17, %c0_18] : memref<2x8x32xf32, #tpu.memory_space<vmem>>, vector<2x8x32xf32>
      %21 = vector.shape_cast %20 : vector<2x8x32xf32> to vector<16x32xf32>
      %c0_19 = arith.constant 0 : index
      %c0_20 = arith.constant 0 : index
      %22 = vector.load %arg3[%c0_19, %c0_20] : memref<1x32xf32, #tpu.memory_space<vmem>>, vector<1x32xf32>
      %c0_21 = arith.constant 0 : index
      %c0_22 = arith.constant 0 : index
      %23 = vector.load %arg4[%c0_21, %c0_22] : memref<1x32xf32, #tpu.memory_space<vmem>>, vector<1x32xf32>
      %cst_23 = arith.constant dense<0.000000e+00> : vector<16xf32>
      %24 = vector.multi_reduction <add>, %21, %cst_23 [1] : vector<16x32xf32> to vector<16xf32>
      %25 = vector.shape_cast %24 : vector<16xf32> to vector<16x1xf32>
      %cst_24 = arith.constant 3.200000e+01 : f32
      %26 = vector.broadcast %cst_24 : f32 to vector<16x1xf32>
      %27 = arith.divf %25, %26 : vector<16x1xf32>
      %28 = vector.broadcast %27 : vector<16x1xf32> to vector<16x32xf32>
      %29 = arith.subf %21, %28 : vector<16x32xf32>
      %30 = arith.mulf %29, %29 : vector<16x32xf32>
      %cst_25 = arith.constant dense<0.000000e+00> : vector<16xf32>
      %31 = vector.multi_reduction <add>, %30, %cst_25 [1] : vector<16x32xf32> to vector<16xf32>
      %32 = vector.shape_cast %31 : vector<16xf32> to vector<16x1xf32>
      %cst_26 = arith.constant 3.200000e+01 : f32
      %33 = vector.broadcast %cst_26 : f32 to vector<16x1xf32>
      %34 = arith.divf %32, %33 : vector<16x1xf32>
      %35 = vector.broadcast %27 : vector<16x1xf32> to vector<16x32xf32>
      %36 = arith.subf %21, %35 : vector<16x32xf32>
      %cst_27 = arith.constant 9.99999974E-6 : f32
      %37 = vector.broadcast %cst_27 : f32 to vector<16x1xf32>
      %38 = arith.addf %34, %37 : vector<16x1xf32>
      %39 = math.rsqrt %38 : vector<16x1xf32>
      %40 = vector.broadcast %39 : vector<16x1xf32> to vector<16x32xf32>
      %41 = arith.mulf %36, %40 : vector<16x32xf32>
      %42 = vector.broadcast %22 : vector<1x32xf32> to vector<16x32xf32>
      %43 = arith.mulf %41, %42 : vector<16x32xf32>
      %44 = vector.broadcast %23 : vector<1x32xf32> to vector<16x32xf32>
      %45 = arith.addf %43, %44 : vector<16x32xf32>
      %46 = arith.truncf %45 : vector<16x32xf32> to vector<16x32xbf16>
      %c0_28 = arith.constant 0 : index
      %c0_29 = arith.constant 0 : index
      %47 = vector.load %arg5[%c0_28, %c0_29] : memref<32x96xbf16, #tpu.memory_space<vmem>>, vector<32x96xbf16>
      %cst_30 = arith.constant dense<0.000000e+00> : vector<16x96xf32>
      %48 = tpu.matmul %46, %47, %cst_30 {dimension_numbers = #tpu.dot_dimension_numbers<[1], [0], [0], [1], [0, 0, 1, 1], [], []>} : vector<16x32xbf16>, vector<32x96xbf16>, vector<16x96xf32> -> vector<16x96xf32>
      %c0_31 = arith.constant 0 : index
      %c0_32 = arith.constant 0 : index
      %49 = vector.load %arg6[%c0_31, %c0_32] : memref<1x96xf32, #tpu.memory_space<vmem>>, vector<1x96xf32>
      %50 = vector.broadcast %49 : vector<1x96xf32> to vector<16x96xf32>
      %51 = arith.addf %48, %50 : vector<16x96xf32>
      %52 = vector.extract_strided_slice %51 {offsets = [0, 0], sizes = [16, 32], strides = [1, 1]} : vector<16x96xf32> to vector<16x32xf32>
      %53 = vector.extract_strided_slice %51 {offsets = [0, 32], sizes = [16, 32], strides = [1, 1]} : vector<16x96xf32> to vector<16x32xf32>
      %54 = vector.extract_strided_slice %51 {offsets = [0, 64], sizes = [16, 32], strides = [1, 1]} : vector<16x96xf32> to vector<16x32xf32>
      %55 = vector.extract_strided_slice %52 {offsets = [0, 0], sizes = [16, 8], strides = [1, 1]} : vector<16x32xf32> to vector<16x8xf32>
      %56 = vector.shape_cast %55 : vector<16x8xf32> to vector<2x8x8xf32>
      %57 = vector.extract_strided_slice %52 {offsets = [0, 8], sizes = [16, 8], strides = [1, 1]} : vector<16x32xf32> to vector<16x8xf32>
      %58 = vector.shape_cast %57 : vector<16x8xf32> to vector<2x8x8xf32>
      %59 = vector.extract_strided_slice %52 {offsets = [0, 16], sizes = [16, 8], strides = [1, 1]} : vector<16x32xf32> to vector<16x8xf32>
      %60 = vector.shape_cast %59 : vector<16x8xf32> to vector<2x8x8xf32>
      %61 = vector.extract_strided_slice %52 {offsets = [0, 24], sizes = [16, 8], strides = [1, 1]} : vector<16x32xf32> to vector<16x8xf32>
      %62 = vector.shape_cast %61 : vector<16x8xf32> to vector<2x8x8xf32>
      %63 = tpu.concatenate %56, %58, %60, %62 in 0 : vector<2x8x8xf32>, vector<2x8x8xf32>, vector<2x8x8xf32>, vector<2x8x8xf32> -> vector<8x8x8xf32>
      %64 = arith.truncf %63 : vector<8x8x8xf32> to vector<8x8x8xbf16>
      %65 = vector.extract_strided_slice %53 {offsets = [0, 0], sizes = [16, 8], strides = [1, 1]} : vector<16x32xf32> to vector<16x8xf32>
      %66 = vector.shape_cast %65 : vector<16x8xf32> to vector<2x8x8xf32>
      %67 = vector.extract_strided_slice %53 {offsets = [0, 8], sizes = [16, 8], strides = [1, 1]} : vector<16x32xf32> to vector<16x8xf32>
      %68 = vector.shape_cast %67 : vector<16x8xf32> to vector<2x8x8xf32>
      %69 = vector.extract_strided_slice %53 {offsets = [0, 16], sizes = [16, 8], strides = [1, 1]} : vector<16x32xf32> to vector<16x8xf32>
      %70 = vector.shape_cast %69 : vector<16x8xf32> to vector<2x8x8xf32>
      %71 = vector.extract_strided_slice %53 {offsets = [0, 24], sizes = [16, 8], strides = [1, 1]} : vector<16x32xf32> to vector<16x8xf32>
      %72 = vector.shape_cast %71 : vector<16x8xf32> to vector<2x8x8xf32>
      %73 = tpu.concatenate %66, %68, %70, %72 in 0 : vector<2x8x8xf32>, vector<2x8x8xf32>, vector<2x8x8xf32>, vector<2x8x8xf32> -> vector<8x8x8xf32>
      %74 = arith.truncf %73 : vector<8x8x8xf32> to vector<8x8x8xbf16>
      %75 = vector.extract_strided_slice %54 {offsets = [0, 0], sizes = [16, 8], strides = [1, 1]} : vector<16x32xf32> to vector<16x8xf32>
      %76 = vector.shape_cast %75 : vector<16x8xf32> to vector<2x8x8xf32>
      %77 = vector.extract_strided_slice %54 {offsets = [0, 8], sizes = [16, 8], strides = [1, 1]} : vector<16x32xf32> to vector<16x8xf32>
      %78 = vector.shape_cast %77 : vector<16x8xf32> to vector<2x8x8xf32>
      %79 = vector.extract_strided_slice %54 {offsets = [0, 16], sizes = [16, 8], strides = [1, 1]} : vector<16x32xf32> to vector<16x8xf32>
      %80 = vector.shape_cast %79 : vector<16x8xf32> to vector<2x8x8xf32>
      %81 = vector.extract_strided_slice %54 {offsets = [0, 24], sizes = [16, 8], strides = [1, 1]} : vector<16x32xf32> to vector<16x8xf32>
      %82 = vector.shape_cast %81 : vector<16x8xf32> to vector<2x8x8xf32>
      %83 = tpu.concatenate %76, %78, %80, %82 in 0 : vector<2x8x8xf32>, vector<2x8x8xf32>, vector<2x8x8xf32>, vector<2x8x8xf32> -> vector<8x8x8xf32>
      %84 = arith.truncf %83 : vector<8x8x8xf32> to vector<8x8x8xbf16>
      "tpu.trace_start"() <{level = 10 : i32, message = "bqd,bkd->bqk"}> : () -> ()
      %cst_33 = arith.constant dense<0.000000e+00> : vector<8x8x8xf32>
      %85 = tpu.matmul %64, %74, %cst_33 {dimension_numbers = #tpu.dot_dimension_numbers<[2], [2], [1], [1], [0, 0, 0, 1, 1, 1], [0], [0]>} : vector<8x8x8xbf16>, vector<8x8x8xbf16>, vector<8x8x8xf32> -> vector<8x8x8xf32>
      "tpu.trace_stop"() : () -> ()
      %cst_34 = arith.constant 0.353553385 : f32
      %86 = vector.broadcast %cst_34 : f32 to vector<8x8x8xf32>
      %87 = arith.mulf %85, %86 : vector<8x8x8xf32>
      %cst_35 = arith.constant dense<0xFF800000> : vector<8x8xf32>
      %88 = vector.multi_reduction <maximumf>, %87, %cst_35 [2] : vector<8x8x8xf32> to vector<8x8xf32>
      %89 = vector.shape_cast %88 : vector<8x8xf32> to vector<8x8x1xf32>
      %90 = vector.broadcast %89 : vector<8x8x1xf32> to vector<8x8x8xf32>
      %91 = arith.subf %87, %90 : vector<8x8x8xf32>
      %92 = math.exp %91 : vector<8x8x8xf32>
      %cst_36 = arith.constant dense<0.000000e+00> : vector<8x8xf32>
      %93 = vector.multi_reduction <add>, %92, %cst_36 [2] : vector<8x8x8xf32> to vector<8x8xf32>
      %94 = vector.shape_cast %93 : vector<8x8xf32> to vector<8x8x1xf32>
      %95 = tpu.reciprocal %94 {approx = true} : vector<8x8x1xf32> -> vector<8x8x1xf32>
      %96 = vector.broadcast %95 : vector<8x8x1xf32> to vector<8x8x8xf32>
      %97 = arith.mulf %92, %96 : vector<8x8x8xf32>
      %98 = arith.truncf %97 : vector<8x8x8xf32> to vector<8x8x8xbf16>
      "tpu.trace_start"() <{level = 10 : i32, message = "bqk,bkd->bqd"}> : () -> ()
      %cst_37 = arith.constant dense<0.000000e+00> : vector<8x8x8xf32>
      %99 = tpu.matmul %98, %84, %cst_37 {dimension_numbers = #tpu.dot_dimension_numbers<[2], [1], [1], [2], [0, 0, 0, 1, 1, 2], [0], [0]>} : vector<8x8x8xbf16>, vector<8x8x8xbf16>, vector<8x8x8xf32> -> vector<8x8x8xf32>
      "tpu.trace_stop"() : () -> ()
      %100 = vector.shape_cast %99 : vector<8x8x8xf32> to vector<4x16x8xf32>
      %c0_38 = arith.constant 0 : index
      %c0_39 = arith.constant 0 : index
      %101 = vector.load %arg7[%c0_38, %c0_39] : memref<32x32xbf16, #tpu.memory_space<vmem>>, vector<32x32xbf16>
      %c0_40 = arith.constant 0 : index
      %c0_41 = arith.constant 0 : index
      %102 = vector.load %arg8[%c0_40, %c0_41] : memref<1x32xf32, #tpu.memory_space<vmem>>, vector<1x32xf32>
      %103 = vector.broadcast %102 : vector<1x32xf32> to vector<16x32xf32>
      %104 = arith.addf %21, %103 : vector<16x32xf32>
      %105 = vector.extract_strided_slice %100 {offsets = [0, 0, 0], sizes = [1, 16, 8], strides = [1, 1, 1]} : vector<4x16x8xf32> to vector<1x16x8xf32>
      %106 = vector.shape_cast %105 : vector<1x16x8xf32> to vector<16x8xf32>
      %107 = arith.truncf %106 : vector<16x8xf32> to vector<16x8xbf16>
      %108 = vector.extract_strided_slice %101 {offsets = [0, 0], sizes = [8, 32], strides = [1, 1]} : vector<32x32xbf16> to vector<8x32xbf16>
      %cst_42 = arith.constant dense<0.000000e+00> : vector<16x32xf32>
      %109 = tpu.matmul %107, %108, %cst_42 {dimension_numbers = #tpu.dot_dimension_numbers<[1], [0], [0], [1], [0, 0, 1, 1], [], []>} : vector<16x8xbf16>, vector<8x32xbf16>, vector<16x32xf32> -> vector<16x32xf32>
      %110 = arith.addf %104, %109 : vector<16x32xf32>
      %111 = vector.extract_strided_slice %100 {offsets = [1, 0, 0], sizes = [1, 16, 8], strides = [1, 1, 1]} : vector<4x16x8xf32> to vector<1x16x8xf32>
      %112 = vector.shape_cast %111 : vector<1x16x8xf32> to vector<16x8xf32>
      %113 = arith.truncf %112 : vector<16x8xf32> to vector<16x8xbf16>
      %114 = vector.extract_strided_slice %101 {offsets = [8, 0], sizes = [8, 32], strides = [1, 1]} : vector<32x32xbf16> to vector<8x32xbf16>
      %cst_43 = arith.constant dense<0.000000e+00> : vector<16x32xf32>
      %115 = tpu.matmul %113, %114, %cst_43 {dimension_numbers = #tpu.dot_dimension_numbers<[1], [0], [0], [1], [0, 0, 1, 1], [], []>} : vector<16x8xbf16>, vector<8x32xbf16>, vector<16x32xf32> -> vector<16x32xf32>
      %116 = arith.addf %110, %115 : vector<16x32xf32>
      %117 = vector.extract_strided_slice %100 {offsets = [2, 0, 0], sizes = [1, 16, 8], strides = [1, 1, 1]} : vector<4x16x8xf32> to vector<1x16x8xf32>
      %118 = vector.shape_cast %117 : vector<1x16x8xf32> to vector<16x8xf32>
      %119 = arith.truncf %118 : vector<16x8xf32> to vector<16x8xbf16>
      %120 = vector.extract_strided_slice %101 {offsets = [16, 0], sizes = [8, 32], strides = [1, 1]} : vector<32x32xbf16> to vector<8x32xbf16>
      %cst_44 = arith.constant dense<0.000000e+00> : vector<16x32xf32>
      %121 = tpu.matmul %119, %120, %cst_44 {dimension_numbers = #tpu.dot_dimension_numbers<[1], [0], [0], [1], [0, 0, 1, 1], [], []>} : vector<16x8xbf16>, vector<8x32xbf16>, vector<16x32xf32> -> vector<16x32xf32>
      %122 = arith.addf %116, %121 : vector<16x32xf32>
      %123 = vector.extract_strided_slice %100 {offsets = [3, 0, 0], sizes = [1, 16, 8], strides = [1, 1, 1]} : vector<4x16x8xf32> to vector<1x16x8xf32>
      %124 = vector.shape_cast %123 : vector<1x16x8xf32> to vector<16x8xf32>
      %125 = arith.truncf %124 : vector<16x8xf32> to vector<16x8xbf16>
      %126 = vector.extract_strided_slice %101 {offsets = [24, 0], sizes = [8, 32], strides = [1, 1]} : vector<32x32xbf16> to vector<8x32xbf16>
      %cst_45 = arith.constant dense<0.000000e+00> : vector<16x32xf32>
      %127 = tpu.matmul %125, %126, %cst_45 {dimension_numbers = #tpu.dot_dimension_numbers<[1], [0], [0], [1], [0, 0, 1, 1], [], []>} : vector<16x8xbf16>, vector<8x32xbf16>, vector<16x32xf32> -> vector<16x32xf32>
      %128 = arith.addf %122, %127 : vector<16x32xf32>
      %c0_46 = arith.constant 0 : index
      %c0_47 = arith.constant 0 : index
      %129 = vector.load %arg9[%c0_46, %c0_47] : memref<1x32xf32, #tpu.memory_space<vmem>>, vector<1x32xf32>
      %c0_48 = arith.constant 0 : index
      %c0_49 = arith.constant 0 : index
      %130 = vector.load %arg10[%c0_48, %c0_49] : memref<1x32xf32, #tpu.memory_space<vmem>>, vector<1x32xf32>
      %cst_50 = arith.constant dense<0.000000e+00> : vector<16xf32>
      %131 = vector.multi_reduction <add>, %128, %cst_50 [1] : vector<16x32xf32> to vector<16xf32>
      %132 = vector.shape_cast %131 : vector<16xf32> to vector<16x1xf32>
      %cst_51 = arith.constant 3.200000e+01 : f32
      %133 = vector.broadcast %cst_51 : f32 to vector<16x1xf32>
      %134 = arith.divf %132, %133 : vector<16x1xf32>
      %135 = vector.broadcast %134 : vector<16x1xf32> to vector<16x32xf32>
      %136 = arith.subf %128, %135 : vector<16x32xf32>
      %137 = arith.mulf %136, %136 : vector<16x32xf32>
      %cst_52 = arith.constant dense<0.000000e+00> : vector<16xf32>
      %138 = vector.multi_reduction <add>, %137, %cst_52 [1] : vector<16x32xf32> to vector<16xf32>
      %139 = vector.shape_cast %138 : vector<16xf32> to vector<16x1xf32>
      %cst_53 = arith.constant 3.200000e+01 : f32
      %140 = vector.broadcast %cst_53 : f32 to vector<16x1xf32>
      %141 = arith.divf %139, %140 : vector<16x1xf32>
      %142 = vector.broadcast %134 : vector<16x1xf32> to vector<16x32xf32>
      %143 = arith.subf %128, %142 : vector<16x32xf32>
      %cst_54 = arith.constant 9.99999974E-6 : f32
      %144 = vector.broadcast %cst_54 : f32 to vector<16x1xf32>
      %145 = arith.addf %141, %144 : vector<16x1xf32>
      %146 = math.rsqrt %145 : vector<16x1xf32>
      %147 = vector.broadcast %146 : vector<16x1xf32> to vector<16x32xf32>
      %148 = arith.mulf %143, %147 : vector<16x32xf32>
      %149 = vector.broadcast %129 : vector<1x32xf32> to vector<16x32xf32>
      %150 = arith.mulf %148, %149 : vector<16x32xf32>
      %151 = vector.broadcast %130 : vector<1x32xf32> to vector<16x32xf32>
      %152 = arith.addf %150, %151 : vector<16x32xf32>
      %153 = arith.truncf %152 : vector<16x32xf32> to vector<16x32xbf16>
      %c0_55 = arith.constant 0 : index
      %c0_56 = arith.constant 0 : index
      %154 = vector.load %arg17[%c0_55, %c0_56] : memref<16x32xbf16, #tpu.memory_space<vmem>>, vector<16x32xbf16>
      tpu.vector_store %arg17[%c0_55, %c0_56], %153 {strides = array<i32>} : memref<16x32xbf16, #tpu.memory_space<vmem>>, vector<16x32xbf16>,
      %c0_57 = arith.constant 0 : index
      %c0_58 = arith.constant 0 : index
      %155 = vector.load %arg14[%c0_57, %c0_58] : memref<1x32xf32, #tpu.memory_space<vmem>>, vector<1x32xf32>
      %156 = vector.broadcast %155 : vector<1x32xf32> to vector<16x32xf32>
      %157 = arith.addf %128, %156 : vector<16x32xf32>
      %c0_59 = arith.constant 0 : index
      %c0_60 = arith.constant 0 : index
      %158 = vector.load %arg16[%c0_59, %c0_60] : memref<16x32xf32, #tpu.memory_space<vmem>>, vector<16x32xf32>
      tpu.vector_store %arg16[%c0_59, %c0_60], %157 {strides = array<i32>} : memref<16x32xf32, #tpu.memory_space<vmem>>, vector<16x32xf32>,
    } else {
    }
    %c0 = arith.constant 0 : index
    %c0_1 = arith.constant 0 : index
    %3 = vector.load %arg17[%c0, %c0_1] : memref<16x32xbf16, #tpu.memory_space<vmem>>, vector<16x32xbf16>
    %c0_2 = arith.constant 0 : index
    %c0_3 = arith.constant 0 : index
    %4 = vector.load %arg11[%c0_2, %c0_3] : memref<32x64xbf16, #tpu.memory_space<vmem>>, vector<32x64xbf16>
    %cst = arith.constant dense<0.000000e+00> : vector<16x64xf32>
    %5 = tpu.matmul %3, %4, %cst {dimension_numbers = #tpu.dot_dimension_numbers<[1], [0], [0], [1], [0, 0, 1, 1], [], []>} : vector<16x32xbf16>, vector<32x64xbf16>, vector<16x64xf32> -> vector<16x64xf32>
    %c0_4 = arith.constant 0 : index
    %c0_5 = arith.constant 0 : index
    %6 = vector.load %arg12[%c0_4, %c0_5] : memref<1x64xf32, #tpu.memory_space<vmem>>, vector<1x64xf32>
    %7 = vector.broadcast %6 : vector<1x64xf32> to vector<16x64xf32>
    %8 = arith.addf %5, %7 : vector<16x64xf32>
    %cst_6 = arith.constant 0.000000e+00 : f32
    %9 = vector.broadcast %cst_6 : f32 to vector<16x64xf32>
    %10 = arith.maximumf %8, %9 : vector<16x64xf32>
    %c0_7 = arith.constant 0 : index
    %c0_8 = arith.constant 0 : index
    %11 = vector.load %arg16[%c0_7, %c0_8] : memref<16x32xf32, #tpu.memory_space<vmem>>, vector<16x32xf32>
    %12 = arith.truncf %10 : vector<16x64xf32> to vector<16x64xbf16>
    %c0_9 = arith.constant 0 : index
    %c0_10 = arith.constant 0 : index
    %13 = vector.load %arg13[%c0_9, %c0_10] : memref<64x32xbf16, #tpu.memory_space<vmem>>, vector<64x32xbf16>
    %cst_11 = arith.constant dense<0.000000e+00> : vector<16x32xf32>
    %14 = tpu.matmul %12, %13, %cst_11 {dimension_numbers = #tpu.dot_dimension_numbers<[1], [0], [0], [1], [0, 0, 1, 1], [], []>} : vector<16x64xbf16>, vector<64x32xbf16>, vector<16x32xf32> -> vector<16x32xf32>
    %15 = arith.addf %11, %14 : vector<16x32xf32>
    %c0_12 = arith.constant 0 : index
    %c0_13 = arith.constant 0 : index
    %16 = vector.load %arg16[%c0_12, %c0_13] : memref<16x32xf32, #tpu.memory_space<vmem>>, vector<16x32xf32>
    tpu.vector_store %arg16[%c0_12, %c0_13], %15 {strides = array<i32>} : memref<16x32xf32, #tpu.memory_space<vmem>>, vector<16x32xf32>,
    %c0_i32_14 = arith.constant 0 : i32
    %17 = arith.cmpi eq, %arg1, %c0_i32_14 : i32
    %18 = arith.extui %17 : i1 to i32
    %c0_i32_15 = arith.constant 0 : i32
    %19 = arith.cmpi ne, %18, %c0_i32_15 : i32
    scf.if %19 {
      %c0_16 = arith.constant 0 : index
      %c0_17 = arith.constant 0 : index
      %20 = vector.load %arg16[%c0_16, %c0_17] : memref<16x32xf32, #tpu.memory_space<vmem>>, vector<16x32xf32>
      %21 = vector.shape_cast %20 : vector<16x32xf32> to vector<2x8x32xf32>
      %c0_18 = arith.constant 0 : index
      %c0_19 = arith.constant 0 : index
      %c0_20 = arith.constant 0 : index
      %22 = vector.load %arg15[%c0_18, %c0_19, %c0_20] : memref<2x8x32xf32, #tpu.memory_space<vmem>>, vector<2x8x32xf32>
      tpu.vector_store %arg15[%c0_18, %c0_19, %c0_20], %21 {strides = array<i32>} : memref<2x8x32xf32, #tpu.memory_space<vmem>>, vector<2x8x32xf32>,
    } else {
    }
    return
  }
  func.func @transform_0(%arg0: i32, %arg1: i32) -> (i32, i32, i32) {
    %c0_i32 = arith.constant 0 : i32
    %c0_i32_0 = arith.constant 0 : i32
    %c0_i32_1 = arith.constant 0 : i32
    return %arg0, %c0_i32, %c0_i32_0 : i32, i32, i32
  }
  func.func @transform_1(%arg0: i32, %arg1: i32) -> (i32, i32) {
    %c0_i32 = arith.constant 0 : i32
    %c0_i32_0 = arith.constant 0 : i32
    %c0_i32_1 = arith.constant 0 : i32
    return %c0_i32, %c0_i32_0 : i32, i32
  }
  func.func @transform_2(%arg0: i32, %arg1: i32) -> (i32, i32) {
    %c0_i32 = arith.constant 0 : i32
    %c0_i32_0 = arith.constant 0 : i32
    %c0_i32_1 = arith.constant 0 : i32
    return %c0_i32, %c0_i32_0 : i32, i32
  }
  func.func @transform_3(%arg0: i32, %arg1: i32) -> (i32, i32) {
    %c0_i32 = arith.constant 0 : i32
    %c0_i32_0 = arith.constant 0 : i32
    %c0_i32_1 = arith.constant 0 : i32
    return %c0_i32, %c0_i32_0 : i32, i32
  }
  func.func @transform_4(%arg0: i32, %arg1: i32) -> (i32, i32) {
    %c0_i32 = arith.constant 0 : i32
    %c0_i32_0 = arith.constant 0 : i32
    %c0_i32_1 = arith.constant 0 : i32
    return %c0_i32, %c0_i32_0 : i32, i32
  }
  func.func @transform_5(%arg0: i32, %arg1: i32) -> (i32, i32) {
    %c0_i32 = arith.constant 0 : i32
    %c0_i32_0 = arith.constant 0 : i32
    %c0_i32_1 = arith.constant 0 : i32
    return %c0_i32, %c0_i32_0 : i32, i32
  }
  func.func @transform_6(%arg0: i32, %arg1: i32) -> (i32, i32) {
    %c0_i32 = arith.constant 0 : i32
    %c0_i32_0 = arith.constant 0 : i32
    %c0_i32_1 = arith.constant 0 : i32
    return %c0_i32, %c0_i32_0 : i32, i32
  }
  func.func @transform_7(%arg0: i32, %arg1: i32) -> (i32, i32) {
    %c0_i32 = arith.constant 0 : i32
    %c0_i32_0 = arith.constant 0 : i32
    %c0_i32_1 = arith.constant 0 : i32
    return %c0_i32, %c0_i32_0 : i32, i32
  }
  func.func @transform_8(%arg0: i32, %arg1: i32) -> (i32, i32) {
    %c0_i32 = arith.constant 0 : i32
    %c0_i32_0 = arith.constant 0 : i32
    %c0_i32_1 = arith.constant 0 : i32
    return %c0_i32, %c0_i32_0 : i32, i32
  }
  func.func @transform_9(%arg0: i32, %arg1: i32) -> (i32, i32) {
    %c0_i32 = arith.constant 0 : i32
    %c0_i32_0 = arith.constant 0 : i32
    return %c0_i32, %arg1 : i32, i32
  }
  func.func @transform_10(%arg0: i32, %arg1: i32) -> (i32, i32) {
    %c0_i32 = arith.constant 0 : i32
    %c0_i32_0 = arith.constant 0 : i32
    return %c0_i32, %arg1 : i32, i32
  }
  func.func @transform_11(%arg0: i32, %arg1: i32) -> (i32, i32) {
    %c0_i32 = arith.constant 0 : i32
    %c0_i32_0 = arith.constant 0 : i32
    return %arg1, %c0_i32 : i32, i32
  }
  func.func @transform_12(%arg0: i32, %arg1: i32) -> (i32, i32) {
    %c0_i32 = arith.constant 0 : i32
    %c0_i32_0 = arith.constant 0 : i32
    %c0_i32_1 = arith.constant 0 : i32
    return %c0_i32, %c0_i32_0 : i32, i32
  }
  func.func @transform_13(%arg0: i32, %arg1: i32) -> (i32, i32, i32) {
    %c0_i32 = arith.constant 0 : i32
    %c0_i32_0 = arith.constant 0 : i32
    %c0_i32_1 = arith.constant 0 : i32
    return %arg0, %c0_i32, %c0_i32_0 : i32, i32, i32
  }
}

</mosaic_0001>

<bundles_post_ra>
// kernel: tpu_custom_call.1
= control target key start
LH: loop header
LB: loop body
LE: loop exit
PB: predicated region body
PF: predicated region fallthrough
CT: control target
= control target key end

     0   :  { %18 = vsyncpa [#allocation5], 0  ;;  %s2455_s0 = inlined_call_operand.vmem [shape: f32[2,8,32], index: 0, kind: input, shape index: {}]   ;;  %s2456_s1 = inlined_call_operand.vmem [shape: f32[1,32], index: 1, kind: input, shape index: {}]   ;;  %s2457_s2 = inlined_call_operand.vmem [shape: f32[1,32], index: 2, kind: input, shape index: {}]   ;;  %s2458_s3 = inlined_call_operand.vmem [shape: bf16[32,96], index: 3, kind: input, shape index: {}]   ;;  %s2459_s4 = inlined_call_operand.hbm [shape: f32[1,96], index: 4, kind: input, shape index: {}]   ;;  %s2460_s5 = inlined_call_operand.vmem [shape: bf16[32,32], index: 5, kind: input, shape index: {}]   ;;  %s2461_s6 = inlined_call_operand.hbm [shape: f32[1,32], index: 6, kind: input, shape index: {}]   ;;  %s2462_s7 = inlined_call_operand.hbm [shape: f32[1,32], index: 7, kind: input, shape index: {}]   ;;  %s2463_s8 = inlined_call_operand.hbm [shape: f32[1,32], index: 8, kind: input, shape index: {}]   ;;  %s2464_s9 = inlined_call_operand.vmem [shape: bf16[32,64], index: 9, kind: input, shape index: {}]   ;;  %s2465_s10 = inlined_call_operand.vmem [shape: f32[1,64], index: 10, kind: input, shape index: {}]   ;;  %s2466_s11 = inlined_call_operand.vmem [shape: bf16[64,32], index: 11, kind: input, shape index: {}]   ;;  %s2467_s12 = inlined_call_operand.vmem [shape: f32[1,32], index: 12, kind: input, shape index: {}]   ;;  %s2468_s13 = inlined_call_operand.hbm [shape: f32[2,8,32], index: 13, kind: output, shape index: {}]  }
   0x1   :  { %19 = vsyncpa [#allocation8], 0 }
   0x2   :  { %20 = vsyncpa [#allocation11], 0 }
   0x3   :  { %21 = vsyncpa [#allocation6], 0  ;;  %s2021_s25 = smov [#allocation7]   ;;  %s2022_s27 = smov [#allocation4]  }
   0x4   :  { %s48_s26 = sshll.u32 %s2021_s25, 4  ;;  %s36_s28 = sshll.u32 %s2022_s27, 4  ;;  %s49_s26 = int_to_ptr.vmem [resolvable:$true] %s48_s26  ;;  %s37_s28 = int_to_ptr.vmem [resolvable:$true] %s36_s28 }
   0x5   :  { %s1903_s14 = scalar_lea.hbm %s2461_s6, 16 }
   0x6   :  { %p1904_p0 = scmp.ne.s32.totalorder %s2461_s6, %s1903_s14  ;;  %p1907_p1 = scmp.lt.u32.totalorder %s1903_s14, %s2461_s6 }
   0x8   :  { %p1909_p2 = pnand %p1907_p1, %p1904_p0 }
   0xa   :  { %1912 = shalt.err (!%p1909_p2)
}
   0xb   :  { %s1913_s19 = scalar_lea.vmem %s49_s26, 16  ;;  %s1917_s20 = scalar_lea.vmem %s49_s26, 32 }
   0xc   :  { %p1914_p3 = scmp.ne.s32.totalorder %s49_s26, %s1913_s19  ;;  %p1918_p4 = scmp.lt.s32.totalorder %s49_s26, %s49_s26 }
   0xd   :  { %p1919_p5 = scmp.lt.s32.totalorder %s1917_s20, %s1913_s19 }
   0xf   :  { %p1920_p6 = por %p1919_p5, %p1918_p4 }
  0x11   :  { %p1921_p7 = pnand %p1920_p6, %p1914_p3 }
  0x13   :  { %1924 = shalt.err (!%p1921_p7)
}
  0x14   :  { %51 = dma.hbm_to_vmem [thread:$0]  %s2461_s6, 16, %s49_s26, [#allocation8]  }
  0x15   :  { %s1925_s25 = scalar_lea.hbm %s2459_s4, 16 }
  0x16   :  { %p1926_p8 = scmp.ne.s32.totalorder %s2459_s4, %s1925_s25  ;;  %p1929_p9 = scmp.lt.u32.totalorder %s1925_s25, %s2459_s4 }
  0x18   :  { %p1931_p10 = pnand %p1929_p9, %p1926_p8 }
  0x1a   :  { %1934 = shalt.err (!%p1931_p10)
}
  0x1b   :  { %s1935_s15 = scalar_lea.vmem %s37_s28, 16  ;;  %s1939_s16 = scalar_lea.vmem %s37_s28, 32 }
  0x1c   :  { %p1936_p11 = scmp.ne.s32.totalorder %s37_s28, %s1935_s15  ;;  %p1940_p12 = scmp.lt.s32.totalorder %s37_s28, %s37_s28 }
  0x1d   :  { %p1941_p13 = scmp.lt.s32.totalorder %s1939_s16, %s1935_s15 }
  0x1f   :  { %p1942_p0 = por %p1941_p13, %p1940_p12 }
  0x21   :  { %p1943_p1 = pnand %p1942_p0, %p1936_p11 }
  0x23   :  { %1946 = shalt.err (!%p1943_p1)
}
  0x24   :  { %39 = dma.hbm_to_vmem [thread:$0]  %s2459_s4, 16, %s37_s28, [#allocation5]  }
  0x25   :  { %s2023_s17 = smov [#allocation9]   ;;  %s2024_s19 = smov [#allocation10]  }
  0x26   :  { %s58_s18 = sshll.u32 %s2023_s17, 4  ;;  %s68_s20 = sshll.u32 %s2024_s19, 4  ;;  %s59_s18 = int_to_ptr.vmem [resolvable:$true] %s58_s18  ;;  %s69_s20 = int_to_ptr.vmem [resolvable:$true] %s68_s20 }
  0x27   :  { %s1947_s23 = scalar_lea.hbm %s2462_s7, 16 }
  0x28   :  { %p1948_p2 = scmp.ne.s32.totalorder %s2462_s7, %s1947_s23  ;;  %p1951_p3 = scmp.lt.u32.totalorder %s1947_s23, %s2462_s7 }
  0x2a   :  { %p1953_p4 = pnand %p1951_p3, %p1948_p2 }
  0x2c   :  { %1956 = shalt.err (!%p1953_p4)
}
  0x2d   :  { %s1957_s4 = scalar_lea.vmem %s59_s18, 16  ;;  %s1961_s28 = scalar_lea.vmem %s59_s18, 32 }
  0x2e   :  { %p1958_p5 = scmp.ne.s32.totalorder %s59_s18, %s1957_s4  ;;  %p1962_p6 = scmp.lt.s32.totalorder %s59_s18, %s59_s18 }
  0x2f   :  { %p1963_p7 = scmp.lt.s32.totalorder %s1961_s28, %s1957_s4 }
  0x31   :  { %p1964_p8 = por %p1963_p7, %p1962_p6 }
  0x33   :  { %p1965_p9 = pnand %p1964_p8, %p1958_p5 }
  0x35   :  { %1968 = shalt.err (!%p1965_p9)
}
  0x36   :  { %61 = dma.hbm_to_vmem [thread:$0]  %s2462_s7, 16, %s59_s18, [#allocation8]  }
  0x37   :  { %s1969_s6 = scalar_lea.hbm %s2463_s8, 16 }
  0x38   :  { %p1970_p10 = scmp.ne.s32.totalorder %s2463_s8, %s1969_s6  ;;  %p1973_p11 = scmp.lt.u32.totalorder %s1969_s6, %s2463_s8 }
  0x3a   :  { %p1975_p12 = pnand %p1973_p11, %p1970_p10 }
  0x3c   :  { %1978 = shalt.err (!%p1975_p12)
}
  0x3d   :  { %s1979_s22 = scalar_lea.vmem %s69_s20, 16  ;;  %s1983_s23 = scalar_lea.vmem %s69_s20, 32 }
  0x3e   :  { %p1980_p13 = scmp.ne.s32.totalorder %s69_s20, %s1979_s22  ;;  %p1984_p0 = scmp.lt.s32.totalorder %s69_s20, %s69_s20 }
  0x3f   :  { %p1985_p1 = scmp.lt.s32.totalorder %s1983_s23, %s1979_s22 }
  0x41   :  { %p1986_p2 = por %p1985_p1, %p1984_p0 }
  0x43   :  { %p1987_p3 = pnand %p1986_p2, %p1980_p13 }
  0x45   :  { %1990 = shalt.err (!%p1987_p3)
}
  0x46   :  { %71 = dma.hbm_to_vmem [thread:$0]  %s2463_s8, 16, %s69_s20, [#allocation11]  }
  0x47   :  { %2013 = dma.done.wait [#allocation5], 16  }
  0x48   :  { %2014 = vsyncadd [#allocation5], 4294967280 }
  0x49   :  { %2015 = dma.done.wait [#allocation8], 32  }
  0x4a   :  { %2016 = vsyncadd [#allocation8], 4294967264 }
  0x4b   :  { %2017 = dma.done.wait [#allocation11], 16  }
  0x4c   :  { %2018 = vsyncadd [#allocation11], 4294967280  ;;  %vm101_vm0 = vcmask 261120   ;;  %v2156_v0 = vld [vmem:[%s2455_s0] sm:$0xff]  ;;  %v2161_v1 = vld [vmem:[%s2455_s0 + $0x8] sm:$0xff]  ;;  %v2025_v15 = vmov 0.0  }
  0x4d   :  { %v102_v2 = vsel %vm101_vm0, %v2156_v0, 0.0  ;;  %v105_v3 = vsel %vm101_vm0, %v2161_v1, 0.0  ;;  %v1855_v14 = vld [vmem:[%s2458_s3] sm:$0xff]   ;;  %1664 = vmatprep.subr.bf16.mxu0 %v2025_v15  ;;  %1672 = vmatprep.subr.bf16.mxu1 %v2025_v15  ;;  %v1856_v16 = vld [vmem:[%s2458_s3 + $0x8] sm:$0xff]   ;;  %vm2026_vm1 = vmmov 0   ;;  %s2029_s15 = smov 104  }
  0x4e   :  { %103 = vadd.xlane.f32.xlu0 %v102_v2  ;;  %1665 = vmatpush3.bf16.msra.mxu0 %v1855_v14  ;;  %v1574_v25 = vld [vmem:[%s2456_s1] ss:$0 sm:$0xff]  ;;  %v1576_v34 = vld [vmem:[#allocation4] ss:$0 sm:$0xff]  ;;  %s2027_s1 = smov 112   ;;  %s2030_s16 = smov 96  }
  0x4f   :  { %1668 = vmatprep.mubr.msk.bf16.mxu0 %vm2026_vm1, %v2025_v15  ;;  %1666 = vmatprep.subr.bf16.mxu0 %v2025_v15  ;;  %v1575_v29 = vld [vmem:[%s2457_s2] ss:$0 sm:$0xff]  ;;  %s2028_s2 = smov 120   ;;  %vm244_vm2 = vcmask 64512   ;;  %s2031_s6 = smov 64   ;;  %vm743_vm3 = vcmask 1043456  }
  0x50   :  { %1674 = vmatprep.mubr.msk.bf16.mxu1 %vm2026_vm1, %v2025_v15  ;;  %vm1499_vm4 = vcmask 523264  }
  0x52   :  { %106 = vadd.xlane.f32.xlu0 %v105_v3  ;;  %1667 = vmatpush3.bf16.msra.mxu0 %v1856_v16 }
  0x53   :  { %1678 = vmatprep.subr.bf16.mxu0 %v2025_v15 }
  0xdb   :  { %v104_v4 = vpop.xlane.xlu0 %103 }
  0xdc   :  { %v109_v5 = vmul.f32 0.03125, %v104_v4 }
  0xde   :  { %v111_v6 = vsub.f32 %v2156_v0, %v109_v5 }
  0xdf   :  { %v107_v7 = vpop.xlane.xlu0 %106 }
  0xe0   :  { %v110_v8 = vmul.f32 0.03125, %v107_v7  ;;  %v113_v9 = vmul.f32 %v111_v6, %v111_v6 }
  0xe2   :  { %v112_v10 = vsub.f32 %v2161_v1, %v110_v8  ;;  %v115_v11 = vsel %vm101_vm0, %v113_v9, 0.0 }
  0xe3   :  { %116 = vadd.xlane.f32.xlu1 %v115_v11 }
  0xe4   :  { %v114_v12 = vmul.f32 %v112_v10, %v112_v10 }
  0xe6   :  { %v118_v13 = vsel %vm101_vm0, %v114_v12, 0.0 }
  0xe7   :  { %119 = vadd.xlane.f32.xlu1 %v118_v13 }
 0x170   :  { %v117_v17 = vpop.xlane.xlu1 %116 }
 0x171   :  { %v121_v18 = vmul.f32 0.03125, %v117_v17 }
 0x173   :  { %v123_v19 = vadd.f32 1e-05, %v121_v18 }
 0x174   :  { %v120_v20 = vpop.xlane.xlu1 %119 }
 0x175   :  { %1863 = vrsqrt.f32 %v123_v19  ;;  %v122_v21 = vmul.f32 0.03125, %v120_v20 }
 0x177   :  { %v124_v22 = vadd.f32 1e-05, %v122_v21 }
 0x179   :  { %1865 = vrsqrt.f32 %v124_v22 }
 0x17f   :  { %v1864_v23 = vpop.eup %1863 }
 0x180   :  { %v127_v24 = vmul.f32 %v1864_v23, %v111_v6 }
 0x182   :  { %v135_v28 = vmul.f32 %v1574_v25, %v127_v24 }
 0x183   :  { %v1866_v26 = vpop.eup %1865 }
 0x184   :  { %v128_v27 = vmul.f32 %v1866_v26, %v112_v10  ;;  %v143_v31 = vadd.f32 %v1575_v29, %v135_v28 }
 0x186   :  { %v136_v30 = vmul.f32 %v1574_v25, %v128_v27 }
 0x188   :  { %v144_v32 = vadd.f32 %v1575_v29, %v136_v30 }
 0x18a   :  { %v145_v33 = vpack.c.bf16 %v144_v32, %v143_v31 }
 0x18c   :  { %1669 = vmatmul.mubr.msk.bf16.vlgmr.msra.gmra.mrb[0].mxu0 %vm101_vm0, %v145_v33 }
 0x18d   :  { %1680 = vmatprep.mubr.msk.bf16.mxu0 %vm2026_vm1, %v2025_v15 }
 0x25f   :  { %v206_v35 = vpop.f32.mrb[0].mxu0 }
 0x260   :  { %v1670_v36 = vpop.f32.mrb[1].mxu0  ;;  %v207_v38 = vadd.f32 %v1576_v34, %v206_v35 }
 0x261   :  { %v209_v37 = vpop.f32.mrb[2].mxu0 }
 0x262   :  { %v210_v39 = vadd.f32 %v1576_v34, %v209_v37  ;;  %v1671_v40 = vpop.f32.mrb[3].mxu0  ;;  %v233_v43 = vpack.c.bf16 %v207_v38, %v207_v38 }
 0x264   :  { %v1845_v41 = vpack.i.bf16 %v210_v39, %v207_v38  ;;  %v2194_v42 = vpack.c.bf16 %v210_v39, %v210_v39 }
 0x266   :  { %1846 = vrot.lane.b32.xlu1 %v1845_v41, %s2027_s1  ;;  %1841 = vrot.lane.b32.xlu0 %v1845_v41, %s2028_s2 }
 0x26a   :  { %1851 = vrot.lane.b32.xlu1 %v1845_v41, %s2029_s15  ;;  %292 = vrot.lane.b32.xlu0 %v2194_v42, %s2030_s16 }
 0x26e   :  { %242 = vrot.lane.b32.xlu1 %v233_v43, %s2030_s16 }
 0x2d8   :  { %v1847_v44 = vpop.permute.xlu1 %1846  ;;  %v1842_v45 = vpop.permute.xlu0 %1841 }
 0x2d9   :  { %v1844_v46 = vunpack.i.h.bf16 %v1842_v45  ;;  %v1843_v47 = vunpack.i.l.bf16 %v1842_v45  ;;  %v1849_v48 = vunpack.i.h.bf16 %v1847_v44  ;;  %v1848_v49 = vunpack.i.l.bf16 %v1847_v44 }
 0x2db   :  { %v2199_v50 = vpack.c.bf16 %v1844_v46, %v1844_v46  ;;  %v2201_v51 = vpack.c.bf16 %v1843_v47, %v1843_v47  ;;  %v2208_v55 = vpack.c.bf16 %v1849_v48, %v1849_v48  ;;  %v2210_v56 = vpack.c.bf16 %v1848_v49, %v1848_v49 }
 0x2dc   :  { %v1852_v52 = vpop.permute.xlu1 %1851  ;;  %v293_v53 = vpop.permute.xlu0 %292 }
 0x2dd   :  { %v298_v54 = vsel %vm244_vm2, %v293_v53, 0  ;;  %341 = vrot.lane.b32.xlu1 %v2201_v51, %s2030_s16  ;;  %390 = vrot.lane.b32.xlu0 %v2199_v50, %s2030_s16  ;;  %v1854_v57 = vunpack.i.h.bf16 %v1852_v52  ;;  %v1853_v58 = vunpack.i.l.bf16 %v1852_v52 }
 0x2de   :  { %1679 = vmatpush3.bf16.xpose.msra.mxu0 %v298_v54 }
 0x2df   :  { %1690 = vmatprep.subr.bf16.mxu0 %v2025_v15  ;;  %v2218_v61 = vpack.c.bf16 %v1854_v57, %v1854_v57  ;;  %v2220_v62 = vpack.c.bf16 %v1853_v58, %v1853_v58 }
 0x2e0   :  { %v243_v59 = vpop.permute.xlu1 %242 }
 0x2e1   :  { %439 = vrot.lane.b32.xlu1 %v2210_v56, %s2030_s16  ;;  %488 = vrot.lane.b32.xlu0 %v2208_v55, %s2030_s16  ;;  %v249_v60 = vsel %vm244_vm2, %v243_v59, 0 }
 0x2e2   :  { %1673 = vmatpush3.bf16.xpose.msra.mxu1 %v249_v60 }
 0x2e3   :  { %1684 = vmatprep.subr.bf16.mxu1 %v2025_v15 }
 0x2e5   :  { %537 = vrot.lane.b32.xlu1 %v2220_v62, %s2030_s16  ;;  %586 = vrot.lane.b32.xlu0 %v2218_v61, %s2030_s16 }
 0x2e6   :  { %1681 = vmatmul.mubr.msk.bf16.vlgmr.msra.gmra.mrb[4].mxu0 %vm244_vm2, %v2194_v42 }
 0x2e7   :  { %1692 = vmatprep.mubr.msk.bf16.mxu0 %vm2026_vm1, %v2025_v15 }
 0x2e9   :  { %1675 = vmatmul.mubr.msk.bf16.vlgmr.msra.gmra.mrb[0].mxu1 %vm244_vm2, %v233_v43  ;;  %738 = vrot.lane.b32.xlu1 %v233_v43, %s2031_s6 }
 0x2ea   :  { %1686 = vmatprep.mubr.msk.bf16.mxu1 %vm2026_vm1, %v2025_v15 }
 0x34f   :  { %v342_v63 = vpop.permute.xlu1 %341  ;;  %v391_v2 = vpop.permute.xlu0 %390 }
 0x350   :  { %v347_v3 = vsel %vm244_vm2, %v342_v63, 0  ;;  %v396_v4 = vsel %vm244_vm2, %v391_v2, 0 }
 0x351   :  { %1685 = vmatpush3.bf16.xpose.msra.mxu1 %v347_v3  ;;  %1691 = vmatpush3.bf16.xpose.msra.mxu0 %v396_v4 }
 0x352   :  { %1696 = vmatprep.subr.bf16.mxu1 %v2025_v15  ;;  %1702 = vmatprep.subr.bf16.mxu0 %v2025_v15 }
 0x353   :  { %v440_v5 = vpop.permute.xlu1 %439  ;;  %v489_v6 = vpop.permute.xlu0 %488 }
 0x354   :  { %v445_v7 = vsel %vm244_vm2, %v440_v5, 0  ;;  %v494_v8 = vsel %vm244_vm2, %v489_v6, 0 }
 0x357   :  { %v538_v9 = vpop.permute.xlu1 %537  ;;  %v587_v10 = vpop.permute.xlu0 %586 }
 0x358   :  { %1687 = vmatmul.mubr.msk.bf16.vlgmr.msra.gmra.mrb[4].mxu1 %vm244_vm2, %v2201_v51  ;;  %1693 = vmatmul.mubr.msk.bf16.vlgmr.msra.gmra.mrb[8].mxu0 %vm244_vm2, %v2199_v50  ;;  %v543_v11 = vsel %vm244_vm2, %v538_v9, 0  ;;  %v592_v12 = vsel %vm244_vm2, %v587_v10, 0 }
 0x359   :  { %1697 = vmatpush3.bf16.xpose.msra.mxu1 %v445_v7  ;;  %1703 = vmatpush3.bf16.xpose.msra.mxu0 %v494_v8 }
 0x35a   :  { %1698 = vmatprep.mubr.msk.bf16.mxu1 %vm2026_vm1, %v2025_v15  ;;  %1704 = vmatprep.mubr.msk.bf16.mxu0 %vm2026_vm1, %v2025_v15 }
 0x35b   :  { %1708 = vmatprep.subr.bf16.mxu1 %v2025_v15  ;;  %1714 = vmatprep.subr.bf16.mxu0 %v2025_v15  ;;  %v739_v13 = vpop.permute.xlu1 %738 }
 0x35c   :  { %v745_v14 = vsel %vm743_vm3, %v739_v13, 0 }
 0x360   :  { %1699 = vmatmul.mubr.msk.bf16.vlgmr.msra.gmra.mrb[8].mxu1 %vm244_vm2, %v2210_v56  ;;  %1705 = vmatmul.mubr.msk.bf16.vlgmr.msra.gmra.mrb[12].mxu0 %vm244_vm2, %v2208_v55 }
 0x361   :  { %1709 = vmatpush3.bf16.xpose.msra.mxu1 %v543_v11  ;;  %1715 = vmatpush3.bf16.xpose.msra.mxu0 %v592_v12 }
 0x362   :  { %1710 = vmatprep.mubr.msk.bf16.mxu1 %vm2026_vm1, %v2025_v15  ;;  %1716 = vmatprep.mubr.msk.bf16.mxu0 %vm2026_vm1, %v2025_v15 }
 0x363   :  { %1720 = vmatprep.subr.bf16.mxu1 %v2025_v15  ;;  %1726 = vmatprep.subr.bf16.mxu0 %v2025_v15 }
 0x368   :  { %1711 = vmatmul.mubr.msk.bf16.vlgmr.msra.gmra.mrb[12].mxu1 %vm244_vm2, %v2220_v62  ;;  %1717 = vmatmul.mubr.msk.bf16.vlgmr.msra.gmra.mrb[16].mxu0 %vm244_vm2, %v2218_v61 }
 0x369   :  { %1721 = vmatpush3.bf16.msra.mxu1 %v745_v14  ;;  %1722 = vmatprep.mubr.msk.bf16.mxu1 %vm2026_vm1, %v2025_v15 }
 0x36a   :  { %1728 = vmatprep.mubr.msk.bf16.mxu0 %vm2026_vm1, %v2025_v15  ;;  %1732 = vmatprep.subr.bf16.mxu1 %v2025_v15 }
 0x3b9   :  { %v334_v16 = vpop.f32.mrb[4].mxu0 }
 0x3ba   :  { %v635_v17 = vmul.f32 0.35355338, %v334_v16  ;;  %v1682_v18 = vpop.f32.mrb[5].mxu0 }
 0x3bb   :  { %v337_v19 = vpop.f32.mrb[6].mxu0 }
 0x3bc   :  { %v1683_v20 = vpop.f32.mrb[7].mxu0  ;;  %v285_v21 = vpop.f32.mrb[0].mxu1  ;;  %v645_v22 = vsel %vm244_vm2, %v635_v17, -inf }
 0x3bd   :  { %v634_v23 = vmul.f32 0.35355338, %v285_v21  ;;  %646 = vmax.xlane.f32.xlu0 %v645_v22  ;;  %v1676_v24 = vpop.f32.mrb[1].mxu1 }
 0x3be   :  { %v288_v25 = vpop.f32.mrb[2].mxu1 }
 0x3bf   :  { %v1677_v26 = vpop.f32.mrb[3].mxu1  ;;  %v642_v27 = vsel %vm244_vm2, %v634_v23, -inf }
 0x3c0   :  { %643 = vmax.xlane.f32.xlu1 %v642_v27 }
 0x42b   :  { %v383_v28 = vpop.f32.mrb[4].mxu1  ;;  %v432_v29 = vpop.f32.mrb[8].mxu0 }
 0x42c   :  { %v636_v30 = vmul.f32 0.35355338, %v383_v28  ;;  %v1688_v31 = vpop.f32.mrb[5].mxu1  ;;  %v1694_v32 = vpop.f32.mrb[9].mxu0  ;;  %v637_v35 = vmul.f32 0.35355338, %v432_v29 }
 0x42d   :  { %v386_v33 = vpop.f32.mrb[6].mxu1  ;;  %v435_v34 = vpop.f32.mrb[10].mxu0 }
 0x42e   :  { %v1689_v36 = vpop.f32.mrb[7].mxu1  ;;  %v1695_v37 = vpop.f32.mrb[11].mxu0  ;;  %v648_v38 = vsel %vm244_vm2, %v636_v30, -inf  ;;  %v651_v39 = vsel %vm244_vm2, %v637_v35, -inf }
 0x42f   :  { %649 = vmax.xlane.f32.xlu0 %v648_v38 }
 0x433   :  { %v481_v40 = vpop.f32.mrb[8].mxu1  ;;  %652 = vmax.xlane.f32.xlu0 %v651_v39  ;;  %v530_v41 = vpop.f32.mrb[12].mxu0 }
 0x434   :  { %v638_v43 = vmul.f32 0.35355338, %v481_v40  ;;  %v639_v44 = vmul.f32 0.35355338, %v530_v41  ;;  %v1700_v45 = vpop.f32.mrb[9].mxu1  ;;  %v1706_v46 = vpop.f32.mrb[13].mxu0 }
 0x435   :  { %v484_v47 = vpop.f32.mrb[10].mxu1  ;;  %v533_v48 = vpop.f32.mrb[14].mxu0 }
 0x436   :  { %v1701_v49 = vpop.f32.mrb[11].mxu1  ;;  %v1707_v52 = vpop.f32.mrb[15].mxu0  ;;  %v654_v53 = vsel %vm244_vm2, %v638_v43, -inf  ;;  %v657_v54 = vsel %vm244_vm2, %v639_v44, -inf }
 0x437   :  { %655 = vmax.xlane.f32.xlu1 %v654_v53  ;;  %658 = vmax.xlane.f32.xlu0 %v657_v54 }
 0x43b   :  { %v579_v57 = vpop.f32.mrb[12].mxu1  ;;  %v628_v58 = vpop.f32.mrb[16].mxu0 }
 0x43c   :  { %v2279_v59 = vmul.f32 0.35355338, %v579_v57  ;;  %v2281_v60 = vmul.f32 0.35355338, %v628_v58  ;;  %v1712_v63 = vpop.f32.mrb[13].mxu1  ;;  %v1718_v2 = vpop.f32.mrb[17].mxu0 }
 0x43d   :  { %v582_v3 = vpop.f32.mrb[14].mxu1  ;;  %v631_v4 = vpop.f32.mrb[18].mxu0 }
 0x43e   :  { %v1713_v5 = vpop.f32.mrb[15].mxu1  ;;  %v1719_v6 = vpop.f32.mrb[19].mxu0  ;;  %v660_v7 = vsel %vm244_vm2, %v2279_v59, -inf  ;;  %v663_v8 = vsel %vm244_vm2, %v2281_v60, -inf }
 0x43f   :  { %661 = vmax.xlane.f32.xlu1 %v660_v7  ;;  %664 = vmax.xlane.f32.xlu0 %v663_v8 }
 0x44a   :  { %v647_v9 = vpop.xlane.xlu0 %646 }
 0x44b   :  { %v667_v11 = vsub.f32 %v635_v17, %v647_v9 }
 0x44d   :  { %v644_v10 = vpop.xlane.xlu1 %643  ;;  %v676_v13 = vmul.f32 1.442695, %v667_v11 }
 0x44e   :  { %v666_v12 = vsub.f32 %v634_v23, %v644_v10 }
 0x44f   :  { %1867 = vpow2.f32 %v676_v13 }
 0x450   :  { %835 = vrot.lane.b32.xlu1 %v2201_v51, %s2031_s6  ;;  %v674_v14 = vmul.f32 1.442695, %v666_v12 }
 0x452   :  { %1869 = vpow2.f32 %v674_v14 }
 0x455   :  { %787 = vrot.lane.b32.xlu0 %v2194_v42, %s2031_s6 }
 0x459   :  { %v1868_v16 = vpop.eup %1867 }
 0x45a   :  { %v693_v20 = vsel %vm244_vm2, %v1868_v16, 0.0 }
 0x45c   :  { %v1870_v18 = vpop.eup %1869 }
 0x45d   :  { %v690_v19 = vsel %vm244_vm2, %v1870_v18, 0.0 }
 0x474   :  { %691 = vadd.xlane.f32.xlu1 %v690_v19  ;;  %694 = vadd.xlane.f32.xlu0 %v693_v20 }
 0x4bc   :  { %v650_v51 = vpop.xlane.xlu0 %649 }
 0x4bd   :  { %v668_v21 = vsub.f32 %v636_v30, %v650_v51 }
 0x4bf   :  { %v678_v22 = vmul.f32 1.442695, %v668_v21 }
 0x4c0   :  { %v653_v42 = vpop.xlane.xlu0 %652 }
 0x4c1   :  { %1871 = vpow2.f32 %v678_v22  ;;  %v669_v24 = vsub.f32 %v637_v35, %v653_v42 }
 0x4c3   :  { %v680_v17 = vmul.f32 1.442695, %v669_v24 }
 0x4c4   :  { %v656_v23 = vpop.xlane.xlu1 %655  ;;  %v659_v25 = vpop.xlane.xlu0 %658 }
 0x4c5   :  { %1873 = vpow2.f32 %v680_v17  ;;  %v670_v26 = vsub.f32 %v638_v43, %v656_v23  ;;  %v671_v27 = vsub.f32 %v639_v44, %v659_v25 }
 0x4c7   :  { %v682_v28 = vmul.f32 1.442695, %v670_v26  ;;  %v684_v29 = vmul.f32 1.442695, %v671_v27 }
 0x4c9   :  { %1875 = vpow2.f32 %v682_v28 }
 0x4ca   :  { %1877 = vpow2.f32 %v684_v29 }
 0x4cb   :  { %v1872_v31 = vpop.eup %1871 }
 0x4cc   :  { %v665_v32 = vpop.xlane.xlu0 %664  ;;  %v696_v33 = vsel %vm244_vm2, %v1872_v31, 0.0  ;;  %v662_v41 = vpop.xlane.xlu1 %661 }
 0x4cd   :  { %697 = vadd.xlane.f32.xlu1 %v696_v33  ;;  %v673_v43 = vsub.f32 %v2281_v60, %v665_v32  ;;  %v672_v44 = vsub.f32 %v2279_v59, %v662_v41  ;;  %v1123_v32 = vld [vmem:[%s2460_s5] sm:$0xf] }
 0x4cf   :  { %v2294_v30 = vpop.eup %1873  ;;  %v688_v45 = vmul.f32 1.442695, %v673_v43  ;;  %v686_v46 = vmul.f32 1.442695, %v672_v44 }
 0x4d0   :  { %v788_v34 = vpop.permute.xlu0 %787  ;;  %v699_v35 = vsel %vm244_vm2, %v2294_v30, 0.0  ;;  %v836_v47 = vpop.permute.xlu1 %835 }
 0x4d1   :  { %v793_v36 = vsel %vm743_vm3, %v788_v34, 0  ;;  %700 = vadd.xlane.f32.xlu0 %v699_v35  ;;  %1879 = vpow2.f32 %v688_v45  ;;  %v841_v63 = vsel %vm743_vm3, %v836_v47, 0  ;;  %v1141_v34 = vsel %vm743_vm3, %v1123_v32, 0  ;;  %v1124_v35 = vld [vmem:[%s2460_s5 + $0x4] sm:$0xf] }
 0x4d2   :  { %1727 = vmatpush3.bf16.msra.mxu0 %v793_v36  ;;  %1881 = vpow2.f32 %v686_v46  ;;  %v1191_v43 = vsel %vm743_vm3, %v1124_v35, 0 }
 0x4d3   :  { %v2299_v37 = vpop.eup %1875  ;;  %1738 = vmatprep.subr.bf16.mxu0 %v2025_v15 }
 0x4d4   :  { %v2302_v38 = vpop.eup %1877  ;;  %v702_v39 = vsel %vm244_vm2, %v2299_v37, 0.0 }
 0x4d5   :  { %703 = vadd.xlane.f32.xlu1 %v702_v39  ;;  %v705_v40 = vsel %vm244_vm2, %v2302_v38, 0.0 }
 0x4d6   :  { %706 = vadd.xlane.f32.xlu0 %v705_v40 }
 0x4e6   :  { %931 = vrot.lane.b32.xlu1 %v2210_v56, %s2031_s6  ;;  %v2316_v56 = vpop.eup %1879 }
 0x4ea   :  { %979 = vrot.lane.b32.xlu1 %v2208_v55, %s2031_s6  ;;  %v2318_v55 = vpop.eup %1881 }
 0x4eb   :  { %v708_v57 = vsel %vm244_vm2, %v2318_v55, 0.0 }
 0x4ec   :  { %883 = vrot.lane.b32.xlu0 %v2199_v50, %s2031_s6  ;;  %v711_v50 = vsel %vm244_vm2, %v2316_v56, 0.0 }
 0x501   :  { %v692_v48 = vpop.xlane.xlu1 %691  ;;  %v695_v49 = vpop.xlane.xlu0 %694 }
 0x502   :  { %1883 = vrcp.f32 %v692_v48 }
 0x503   :  { %1885 = vrcp.f32 %v695_v49 }
 0x50b   :  { %712 = vadd.xlane.f32.xlu0 %v711_v50 }
 0x50c   :  { %v1884_v52 = vpop.eup %1883 }
 0x50d   :  { %v1886_v53 = vpop.eup %1885  ;;  %v722_v54 = vmul.f32 %v1884_v52, %v1870_v18 }
 0x50e   :  { %v723_v58 = vmul.f32 %v1886_v53, %v1868_v16  ;;  %709 = vadd.xlane.f32.xlu1 %v708_v57 }
 0x50f   :  { %v730_v59 = vpack.c.bf16 %v722_v54, %v722_v54 }
 0x510   :  { %v731_v60 = vpack.c.bf16 %v723_v58, %v723_v58 }
 0x511   :  { %1723 = vmatmul.mubr.msk.bf16.vlgmr.msra.gmra.mrb[16].mxu1 %vm244_vm2, %v730_v59 }
 0x512   :  { %1729 = vmatmul.mubr.msk.bf16.vlgmr.msra.gmra.mrb[20].mxu0 %vm244_vm2, %v731_v60  ;;  %1733 = vmatpush3.bf16.msra.mxu1 %v841_v63 }
 0x513   :  { %1734 = vmatprep.mubr.msk.bf16.mxu1 %vm2026_vm1, %v2025_v15  ;;  %1744 = vmatprep.subr.bf16.mxu1 %v2025_v15 }
 0x514   :  { %1740 = vmatprep.mubr.msk.bf16.mxu0 %vm2026_vm1, %v2025_v15 }
 0x51f   :  { %1027 = vrot.lane.b32.xlu1 %v2220_v62, %s2031_s6 }
 0x521   :  { %1075 = vrot.lane.b32.xlu0 %v2218_v61, %s2031_s6 }
 0x55a   :  { %v698_v2 = vpop.xlane.xlu1 %697 }
 0x55b   :  { %1887 = vrcp.f32 %v698_v2 }
 0x55e   :  { %v701_v3 = vpop.xlane.xlu0 %700 }
 0x55f   :  { %1889 = vrcp.f32 %v701_v3 }
 0x562   :  { %v704_v4 = vpop.xlane.xlu1 %703 }
 0x563   :  { %1891 = vrcp.f32 %v704_v4  ;;  %v707_v5 = vpop.xlane.xlu0 %706 }
 0x564   :  { %1893 = vrcp.f32 %v707_v5 }
 0x565   :  { %v1888_v6 = vpop.eup %1887 }
 0x566   :  { %v724_v7 = vmul.f32 %v1888_v6, %v1872_v31  ;;  %v932_v8 = vpop.permute.xlu1 %931 }
 0x567   :  { %v884_v9 = vpop.permute.xlu0 %883  ;;  %v937_v61 = vsel %vm743_vm3, %v932_v8, 0 }
 0x568   :  { %v889_v10 = vsel %vm743_vm3, %v884_v9, 0  ;;  %v732_v11 = vpack.c.bf16 %v724_v7, %v724_v7  ;;  %v1126_v7 = vld [vmem:[%s2460_s5 + $0xc] sm:$0xf] }
 0x569   :  { %v1890_v12 = vpop.eup %1889  ;;  %1739 = vmatpush3.bf16.msra.mxu0 %v889_v10  ;;  %v1291_v9 = vsel %vm743_vm3, %v1126_v7, 0 }
 0x56a   :  { %v725_v62 = vmul.f32 %v1890_v12, %v2294_v30  ;;  %1735 = vmatmul.mubr.msk.bf16.vlgmr.msra.gmra.mrb[20].mxu1 %vm244_vm2, %v732_v11  ;;  %1750 = vmatprep.subr.bf16.mxu0 %v2025_v15  ;;  %v980_v13 = vpop.permute.xlu1 %979 }
 0x56b   :  { %1745 = vmatpush3.bf16.msra.mxu1 %v937_v61  ;;  %1746 = vmatprep.mubr.msk.bf16.mxu1 %vm2026_vm1, %v2025_v15  ;;  %v985_v20 = vsel %vm743_vm3, %v980_v13, 0 }
 0x56c   :  { %v733_v14 = vpack.c.bf16 %v725_v62, %v725_v62  ;;  %1756 = vmatprep.subr.bf16.mxu1 %v2025_v15 }
 0x56d   :  { %v1892_v16 = vpop.eup %1891 }
 0x56e   :  { %v1894_v18 = vpop.eup %1893  ;;  %v726_v19 = vmul.f32 %v1892_v16, %v2299_v37  ;;  %1741 = vmatmul.mubr.msk.bf16.vlgmr.msra.gmra.mrb[24].mxu0 %vm244_vm2, %v733_v14 }
 0x56f   :  { %1751 = vmatpush3.bf16.msra.mxu0 %v985_v20  ;;  %1752 = vmatprep.mubr.msk.bf16.mxu0 %vm2026_vm1, %v2025_v15  ;;  %v727_v51 = vmul.f32 %v1894_v18, %v2302_v38 }
 0x570   :  { %v734_v21 = vpack.c.bf16 %v726_v19, %v726_v19  ;;  %1762 = vmatprep.subr.bf16.mxu0 %v2025_v15  ;;  %v1596_v19 = vld [vmem:[#allocation7] ss:$0 sm:$0xff] }
 0x571   :  { %v735_v22 = vpack.c.bf16 %v727_v51, %v727_v51  ;;  %v1134_v20 = vadd.f32 %v1596_v19, %v2156_v0  ;;  %v1135_v51 = vadd.f32 %v1596_v19, %v2161_v1 }
 0x572   :  { %1747 = vmatmul.mubr.msk.bf16.vlgmr.msra.gmra.mrb[24].mxu1 %vm244_vm2, %v734_v21 }
 0x573   :  { %1758 = vmatprep.mubr.msk.bf16.mxu1 %vm2026_vm1, %v2025_v15 }
 0x576   :  { %1753 = vmatmul.mubr.msk.bf16.vlgmr.msra.gmra.mrb[28].mxu0 %vm244_vm2, %v735_v22  ;;  %v1603_v22 = vld [vmem:[%s2467_s12] ss:$0 sm:$0xff] }
 0x577   :  { %1764 = vmatprep.mubr.msk.bf16.mxu0 %vm2026_vm1, %v2025_v15 }
 0x598   :  { %v713_v42 = vpop.xlane.xlu0 %712 }
 0x599   :  { %1895 = vrcp.f32 %v713_v42 }
 0x59b   :  { %v710_v24 = vpop.xlane.xlu1 %709 }
 0x59c   :  { %1897 = vrcp.f32 %v710_v24  ;;  %v1076_v17 = vpop.permute.xlu0 %1075 }
 0x59d   :  { %v1081_v23 = vsel %vm743_vm3, %v1076_v17, 0 }
 0x59e   :  { %1763 = vmatpush3.bf16.msra.mxu0 %v1081_v23 }
 0x59f   :  { %v1028_v25 = vpop.permute.xlu1 %1027  ;;  %1792 = vmatprep.subr.bf16.mxu0 %v2025_v15 }
 0x5a0   :  { %v1033_v26 = vsel %vm743_vm3, %v1028_v25, 0 }
 0x5a1   :  { %1757 = vmatpush3.bf16.msra.mxu1 %v1033_v26 }
 0x5a2   :  { %1768 = vmatprep.subr.bf16.mxu1 %v2025_v15 }
 0x5a3   :  { %v1896_v27 = vpop.eup %1895 }
 0x5a4   :  { %v729_v28 = vmul.f32 %v1896_v27, %v2316_v56  ;;  %v1125_v56 = vld [vmem:[%s2460_s5 + $0x8] sm:$0xf] }
 0x5a5   :  { %v1241_v54 = vsel %vm743_vm3, %v1125_v56, 0 }
 0x5a6   :  { %v1898_v29 = vpop.eup %1897  ;;  %v737_v31 = vpack.c.bf16 %v729_v28, %v729_v28 }
 0x5a7   :  { %v728_v33 = vmul.f32 %v1898_v29, %v2318_v55 }
 0x5a8   :  { %1765 = vmatmul.mubr.msk.bf16.vlgmr.msra.gmra.mrb[32].mxu0 %vm244_vm2, %v737_v31 }
 0x5a9   :  { %v736_v30 = vpack.c.bf16 %v728_v33, %v728_v33  ;;  %1796 = vmatprep.mubr.msk.bf16.mxu0 %vm2026_vm1, %v2025_v15 }
 0x5ab   :  { %1759 = vmatmul.mubr.msk.bf16.vlgmr.msra.gmra.mrb[28].mxu1 %vm244_vm2, %v736_v30 }
 0x5ac   :  { %1769 = vmatpush3.bf16.msra.mxu1 %v1141_v34  ;;  %1770 = vmatprep.mubr.msk.bf16.mxu1 %vm2026_vm1, %v2025_v15 }
 0x5ad   :  { %1774 = vmatprep.subr.bf16.mxu1 %v2025_v15 }
 0x5e4   :  { %v781_v36 = vpop.f32.mrb[16].mxu1 }
 0x5e5   :  { %v829_v37 = vpop.f32.mrb[20].mxu0  ;;  %v1724_v38 = vpop.f32.mrb[17].mxu1 }
 0x5e6   :  { %v1136_v39 = vpack.c.bf16 %v829_v37, %v781_v36  ;;  %v1730_v40 = vpop.f32.mrb[21].mxu0  ;;  %v784_v41 = vpop.f32.mrb[18].mxu1  ;;  %v1857_v38 = vld [vmem:[%s2464_s9] sm:$0xff]  }
 0x5e7   :  { %v832_v44 = vpop.f32.mrb[22].mxu0  ;;  %v1725_v45 = vpop.f32.mrb[19].mxu1  ;;  %1793 = vmatpush3.bf16.msra.mxu0 %v1857_v38 }
 0x5e8   :  { %v1731_v46 = vpop.f32.mrb[23].mxu0  ;;  %1771 = vmatmul.mubr.msk.bf16.vlgmr.msra.gmra.mrb[32].mxu1 %vm244_vm2, %v1136_v39  ;;  %v1858_v39 = vld [vmem:[%s2464_s9 + $0x8] sm:$0xff]   ;;  %1794 = vmatprep.subr.bf16.mxu0 %v2025_v15 }
 0x5e9   :  { %1775 = vmatpush3.bf16.msra.mxu1 %v1191_v43  ;;  %1776 = vmatprep.mubr.msk.bf16.mxu1 %vm2026_vm1, %v2025_v15 }
 0x5ea   :  { %1780 = vmatprep.subr.bf16.mxu1 %v2025_v15 }
 0x5eb   :  { %1795 = vmatpush3.bf16.msra.mxu0 %v1858_v39 }
 0x5ec   :  { %1800 = vmatprep.subr.bf16.mxu0 %v2025_v15 }
 0x63d   :  { %v877_v47 = vpop.f32.mrb[20].mxu1 }
 0x63e   :  { %v1736_v48 = vpop.f32.mrb[21].mxu1 }
 0x63f   :  { %v880_v49 = vpop.f32.mrb[22].mxu1 }
 0x640   :  { %v1737_v55 = vpop.f32.mrb[23].mxu1  ;;  %v1601_v49 = vld [vmem:[#allocation9] ss:$0 sm:$0xff] }
 0x641   :  { %v925_v50 = vpop.f32.mrb[24].mxu0 }
 0x642   :  { %v1186_v52 = vpack.c.bf16 %v925_v50, %v877_v47  ;;  %v1742_v53 = vpop.f32.mrb[25].mxu0 }
 0x643   :  { %v928_v57 = vpop.f32.mrb[26].mxu0 }
 0x644   :  { %v1743_v58 = vpop.f32.mrb[27].mxu0  ;;  %1777 = vmatmul.mubr.msk.bf16.vlgmr.msra.gmra.mrb[32].mxu1 %vm244_vm2, %v1186_v52  ;;  %v1602_v52 = vld [vmem:[#allocation10] ss:$0 sm:$0xff] }
 0x645   :  { %v973_v59 = vpop.f32.mrb[24].mxu1  ;;  %1781 = vmatpush3.bf16.msra.mxu1 %v1241_v54  ;;  %1782 = vmatprep.mubr.msk.bf16.mxu1 %vm2026_vm1, %v2025_v15 }
 0x646   :  { %v1748_v60 = vpop.f32.mrb[25].mxu1  ;;  %1786 = vmatprep.subr.bf16.mxu1 %v2025_v15 }
 0x647   :  { %v976_v63 = vpop.f32.mrb[26].mxu1 }
 0x648   :  { %v1749_v2 = vpop.f32.mrb[27].mxu1  ;;  %v1860_v63 = vld [vmem:[%s2466_s11 + $0x8] sm:$0xff]  }
 0x649   :  { %v1021_v3 = vpop.f32.mrb[28].mxu0  ;;  %v1861_v2 = vld [vmem:[%s2466_s11 + $0x10] sm:$0xff]  }
 0x64a   :  { %v1236_v4 = vpack.c.bf16 %v1021_v3, %v973_v59  ;;  %v1754_v5 = vpop.f32.mrb[29].mxu0  ;;  %v1859_v59 = vld [vmem:[%s2466_s11] sm:$0xff]   ;;  %v1862_v3 = vld [vmem:[%s2466_s11 + $0x18] sm:$0xff]  }
 0x64b   :  { %v1024_v6 = vpop.f32.mrb[30].mxu0 }
 0x64c   :  { %v1755_v8 = vpop.f32.mrb[31].mxu0 }
 0x650   :  { %1783 = vmatmul.mubr.msk.bf16.vlgmr.msra.gmra.mrb[32].mxu1 %vm244_vm2, %v1236_v4  ;;  %v1604_v4 = vld [vmem:[%s2465_s10] ss:$0 sm:$0xff]  ;;  %s2032_s10 = smov [#allocation12]  }
 0x651   :  { %1787 = vmatpush3.bf16.msra.mxu1 %v1291_v9  ;;  %1788 = vmatprep.mubr.msk.bf16.mxu1 %vm2026_vm1, %v2025_v15  ;;  %s1560_s11 = sshll.u32 %s2032_s10, 4  ;;  %s1561_s11 = int_to_ptr.vmem [resolvable:$true] %s1560_s11 }
 0x652   :  { %s1991_s2 = scalar_lea.vmem %s1561_s11, 256  ;;  %p1996_p5 = scmp.lt.s32.totalorder %s1561_s11, %s1561_s11 }
 0x653   :  { %p1992_p4 = scmp.ne.s32.totalorder %s1561_s11, %s1991_s2  ;;  %p1997_p6 = scmp.lt.s32.totalorder %s1991_s2, %s1991_s2 }
 0x655   :  { %p1998_p7 = por %p1997_p6, %p1996_p5 }
 0x657   :  { %p1999_p8 = pnand %p1998_p7, %p1992_p4 }
 0x67b   :  { %v1117_v10 = vpop.f32.mrb[32].mxu0 }
 0x67c   :  { %v1766_v11 = vpop.f32.mrb[33].mxu0 }
 0x67d   :  { %v1120_v12 = vpop.f32.mrb[34].mxu0 }
 0x67e   :  { %v1767_v62 = vpop.f32.mrb[35].mxu0  ;;  %v1069_v61 = vpop.f32.mrb[28].mxu1 }
 0x67f   :  { %v1286_v13 = vpack.c.bf16 %v1117_v10, %v1069_v61  ;;  %v1760_v14 = vpop.f32.mrb[29].mxu1 }
 0x680   :  { %v1072_v16 = vpop.f32.mrb[30].mxu1 }
 0x681   :  { %v1761_v18 = vpop.f32.mrb[31].mxu1  ;;  %1789 = vmatmul.mubr.msk.bf16.vlgmr.msra.gmra.mrb[32].mxu1 %vm244_vm2, %v1286_v13 }
 0x754   :  { %v1327_v21 = vpop.f32.mrb[32].mxu1 }
 0x755   :  { %v1812_v42 = vadd.f32 %v1327_v21, %v1134_v20  ;;  %v1790_v24 = vpop.f32.mrb[33].mxu1 }
 0x756   :  { %v1330_v17 = vpop.f32.mrb[34].mxu1 }
 0x757   :  { %v1389_v23 = vadd.f32 %v1812_v42, %v1603_v22  ;;  %v1813_v25 = vadd.f32 %v1330_v17, %v1135_v51  ;;  %v1791_v26 = vpop.f32.mrb[35].mxu1  ;;  %v1338_v27 = vsel %vm101_vm0, %v1812_v42, 0.0 }
 0x758   :  { %1339 = vadd.xlane.f32.xlu1 %v1338_v27 }
 0x759   :  { %1391 = vst.msk [vmem:[#allocation2] sm:$0xff] %vm101_vm0, %v1389_v23  ;;  %v1390_v28 = vadd.f32 %v1813_v25, %v1603_v22  ;;  %v1341_v0 = vsel %vm101_vm0, %v1813_v25, 0.0 }
 0x75a   :  { %1342 = vadd.xlane.f32.xlu0 %v1341_v0 }
 0x75b   :  { %1392 = vst.msk [vmem:[#allocation2 + $0x8] sm:$0xff] %vm101_vm0, %v1390_v28 }
 0x762   :  { %v1465_v16 = vld [vmem:[#allocation2 + $0x8] sm:$0xff] }
 0x7e5   :  { %v1340_v1 = vpop.xlane.xlu1 %1339 }
 0x7e6   :  { %v1344_v29 = vmul.f32 0.03125, %v1340_v1 }
 0x7e7   :  { %v1343_v31 = vpop.xlane.xlu0 %1342 }
 0x7e8   :  { %v1346_v32 = vsub.f32 %v1812_v42, %v1344_v29  ;;  %v1345_v33 = vmul.f32 0.03125, %v1343_v31 }
 0x7ea   :  { %v1347_v30 = vsub.f32 %v1813_v25, %v1345_v33  ;;  %v1348_v34 = vmul.f32 %v1346_v32, %v1346_v32 }
 0x7ec   :  { %v1350_v35 = vsel %vm101_vm0, %v1348_v34, 0.0  ;;  %v1349_v36 = vmul.f32 %v1347_v30, %v1347_v30 }
 0x7ed   :  { %1351 = vadd.xlane.f32.xlu0 %v1350_v35 }
 0x7ee   :  { %v1353_v37 = vsel %vm101_vm0, %v1349_v36, 0.0 }
 0x7f1   :  { %1354 = vadd.xlane.f32.xlu0 %v1353_v37 }
 0x87a   :  { %v1352_v40 = vpop.xlane.xlu0 %1351 }
 0x87b   :  { %v1356_v41 = vmul.f32 0.03125, %v1352_v40 }
 0x87d   :  { %v1358_v43 = vadd.f32 1e-05, %v1356_v41 }
 0x87e   :  { %v1355_v44 = vpop.xlane.xlu0 %1354 }
 0x87f   :  { %1899 = vrsqrt.f32 %v1358_v43  ;;  %v1357_v45 = vmul.f32 0.03125, %v1355_v44 }
 0x881   :  { %v1359_v46 = vadd.f32 1e-05, %v1357_v45 }
 0x883   :  { %1901 = vrsqrt.f32 %v1359_v46 }
 0x889   :  { %v1900_v47 = vpop.eup %1899 }
 0x88a   :  { %v1362_v48 = vmul.f32 %v1900_v47, %v1346_v32 }
 0x88c   :  { %v1370_v55 = vmul.f32 %v1601_v49, %v1362_v48 }
 0x88d   :  { %v1902_v56 = vpop.eup %1901 }
 0x88e   :  { %v1363_v50 = vmul.f32 %v1902_v56, %v1347_v30  ;;  %v1378_v54 = vadd.f32 %v1602_v52, %v1370_v55 }
 0x890   :  { %v1371_v53 = vmul.f32 %v1601_v49, %v1363_v50 }
 0x892   :  { %v1379_v57 = vadd.f32 %v1602_v52, %v1371_v53 }
 0x894   :  { %v1380_v58 = vpack.c.bf16 %v1379_v57, %v1378_v54 }
 0x896   :  { %1381 = vst.msk [vmem:[#allocation3] sm:$0xff] %vm101_vm0, %v1380_v58 }
 0x89d   :  { %v1393_v60 = vld [vmem:[#allocation3] sm:$0xff] }
 0x89e   :  { %1797 = vmatmul.mubr.msk.bf16.vlgmr.msra.gmra.mrb[36].mxu0 %vm101_vm0, %v1393_v60 }
 0x89f   :  { %1801 = vmatpush3.bf16.msra.mxu0 %v1859_v59  ;;  %1808 = vmatprep.mubr.msk.bf16.mxu0 %vm2026_vm1, %v2025_v15 }
 0x8a0   :  { %1802 = vmatprep.subr.bf16.mxu0 %v2025_v15 }
 0x8a3   :  { %1803 = vmatpush3.bf16.msra.mxu0 %v1860_v63 }
 0x8a4   :  { %1804 = vmatprep.subr.bf16.mxu0 %v2025_v15 }
 0x8a7   :  { %1805 = vmatpush3.bf16.msra.mxu0 %v1861_v2 }
 0x8a8   :  { %1806 = vmatprep.subr.bf16.mxu0 %v2025_v15  ;;  %v1464_v15 = vld [vmem:[#allocation2] sm:$0xff] }
 0x8ab   :  { %1807 = vmatpush3.bf16.msra.mxu0 %v1862_v3 }
 0x971   :  { %v1455_v5 = vpop.f32.mrb[36].mxu0 }
 0x972   :  { %v1456_v6 = vadd.f32 %v1604_v4, %v1455_v5  ;;  %v1798_v7 = vpop.f32.mrb[37].mxu0 }
 0x973   :  { %v1458_v8 = vpop.f32.mrb[38].mxu0 }
 0x974   :  { %v1459_v9 = vadd.f32 %v1604_v4, %v1458_v8  ;;  %v1799_v10 = vpop.f32.mrb[39].mxu0  ;;  %v1462_v11 = vmax.f32 %v1456_v6, 0.0 }
 0x976   :  { %v1463_v12 = vmax.f32 %v1459_v9, 0.0 }
 0x978   :  { %v1466_v62 = vpack.c.bf16 %v1463_v12, %v1462_v11 }
 0x97a   :  { %1809 = vmatmul.mubr.msk.bf16.vlgmr.msra.gmra.mrb[40].mxu0 %vm1499_vm4, %v1466_v62 }
 0xa4d   :  { %v1537_v61 = vpop.f32.mrb[40].mxu0 }
 0xa4e   :  { %v1544_v13 = vadd.f32 %v1537_v61, %v1464_v15  ;;  %v1810_v14 = vpop.f32.mrb[41].mxu0 }
 0xa4f   :  { %v1540_v18 = vpop.f32.mrb[42].mxu0 }
 0xa50   :  { %1546 = vst.msk [vmem:[#allocation2] sm:$0xff] %vm101_vm0, %v1544_v13  ;;  %v1545_v19 = vadd.f32 %v1540_v18, %v1465_v16  ;;  %v1811_v20 = vpop.f32.mrb[43].mxu0 }
 0xa52   :  { %1547 = vst.msk [vmem:[#allocation2 + $0x8] sm:$0xff] %vm101_vm0, %v1545_v19 }
 0xa57   :  { %v1551_v51 = vld [vmem:[#allocation2] sm:$0xff] }
 0xa58   :  { %1553 = vst.msk [vmem:[#allocation12] sm:$0xff] %vm101_vm0, %v1551_v51 }
 0xa59   :  { %v1552_v21 = vld [vmem:[#allocation2 + $0x8] sm:$0xff] }
 0xa5a   :  { %1554 = vst.msk [vmem:[#allocation12 + $0x8] sm:$0xff] %vm101_vm0, %v1552_v21 }
 0xa5b   :  { %2002 = shalt.err (!%p1999_p8)
}
 0xa5c   :  { %s2003_s6 = scalar_lea.hbm %s2468_s13, 256 }
 0xa5d   :  { %p2004_p9 = scmp.ne.s32.totalorder %s2468_s13, %s2003_s6  ;;  %p2007_p10 = scmp.lt.u32.totalorder %s2003_s6, %s2468_s13 }
 0xa5f   :  { %p2009_p11 = pnand %p2007_p10, %p2004_p9 }
 0xa61   :  { %2012 = shalt.err (!%p2009_p11)
}
 0xa62   :  { %s2033_s22 = smov 128   ;;  %s2034_s23 = smov 8  }
 0xa63   :  { %1566 = dma.vmem_to_hbm [thread:$0]  %s1561_s11, 256, %s2468_s13, [#allocation6], %s2033_s22, %s2033_s22, %s2034_s23  }
 0xa64   :  { %2019 = dma.done.wait [#allocation6], 256  }
 0xa65   :  { %2020 = vsyncadd [#allocation6], 4294967040 }
 0xa66   :  { %1570 = vsyncpa [#allocation5], 1 }
 0xa67   :  { %1571 = vsyncpa [#allocation8], 1 }
 0xa68   :  { %1572 = vsyncpa [#allocation11], 1 }
 0xa69   :  { %1573 = vsyncpa [#allocation6], 1 }

</bundles_post_ra>
